<compile_context>
chip_gen: v6e
topology: v6e:2x2x1
jax: 0.10.0
libtpu: 0.0.40
codegen_flags: <defaults>
</compile_context>

<pallas_src>
import functools

import jax
import jax.numpy as jnp
from jax.experimental import pallas as pl
from jax.experimental.pallas import tpu as pltpu  # noqa: F401  (TPU backend)

# ----------------------------- config ---------------------------------------
D_MODEL = 32
N_HEADS = 4
D_K = D_MODEL // N_HEADS
D_FF = 64
EPS = 1e-6

LANE = 128        # TPU lane width
D_PAD = LANE      # padded model dim (lane-dense)
F_PAD = LANE      # padded feed-forward dim (lane-dense)


# ----------------------------- layer norm ------------------------------------
def _layernorm(x, g, b, lane_mask, d_real, eps):
    """Reference LayerNorm: a2*(x-mean)/sqrt(std_unbiased**2 + eps) + b2.

    `x` is lane-padded to 128 with exact zeros; `lane_mask` keeps the padded
    lanes out of the (unbiased) variance so statistics match the 32-wide op.
    """
    mean = jnp.sum(x, axis=-1, keepdims=True) * (1.0 / d_real)
    diff = (x - mean) * lane_mask
    var = jnp.sum(diff * diff, axis=-1, keepdims=True) * (1.0 / (d_real - 1))
    # rsqrt -> EUP slot (free filler next to the VALU work)
    return diff * jax.lax.rsqrt(var + eps) * g + b


# ----------------------------- fused kernel ----------------------------------
def _encoder_layer_kernel(x_ref, mask_ref,
                          ln0_g_ref, ln0_b_ref,
                          wqkv_ref, bqkv_ref, wo_ref, bo_ref,
                          ln1_g_ref, ln1_b_ref,
                          w1_ref, b1_ref, w2_ref, b2_ref,
                          o_ref,
                          *, batch, seq, n_heads, d_k, d_model, eps):
    d = n_heads * d_k
    x = x_ref[...]                                  # (B*T, 128); lanes >= D are 0

    # Hoisted lane mask for both LayerNorms.
    lane_idx = jax.lax.broadcasted_iota(jnp.int32, (1, x.shape[-1]), 1)
    lane_mask = (lane_idx < d_model).astype(jnp.float32)

    # ---------- sublayer 0: pre-LN multi-head self-attention + residual -----
    xn = _layernorm(x, ln0_g_ref[...], ln0_b_ref[...], lane_mask, d_model, eps)
    # One lane-dense (B*T,128)@(128,128) fused QKV matmul; 1/sqrt(d_k) folded
    # into Q.  Lane layout: Q=[0,d), K=[d,2d), V=[2d,3d), rest zero.
    qkv = jnp.dot(xn, wqkv_ref[...],
                  preferred_element_type=jnp.float32) + bqkv_ref[...]

    batch_outs = []
    for b in range(batch):                          # static unroll (B=2)
        row = slice(b * seq, (b + 1) * seq)
        add_mask = mask_ref[b]                      # (T, T) additive 0/-1e9 mask
        head_outs = []
        for h in range(n_heads):                    # static unroll (H=4)
            qh = qkv[row, h * d_k:(h + 1) * d_k]                    # (T, Dk)
            kh = qkv[row, d + h * d_k:d + (h + 1) * d_k]
            vh = qkv[row, 2 * d + h * d_k:2 * d + (h + 1) * d_k]
            # scores = q @ k^T via dot_general (contract last dims, no k.T)
            s = jax.lax.dot_general(
                qh, kh, dimension_numbers=(((1,), (1,)), ((), ())),
                preferred_element_type=jnp.float32)
            s = s + add_mask
            s = s - jnp.max(s, axis=-1, keepdims=True)
            p = jnp.exp(s)
            # divide -> EUP reciprocal instead of a VALU divide
            p = p * pl.reciprocal(jnp.sum(p, axis=-1, keepdims=True),
                                  approx=True)
            head_outs.append(jnp.dot(p, vh,
                                     preferred_element_type=jnp.float32))
        # concat heads along lanes: (T, D) stays in vregs (no VMEM scratch)
        batch_outs.append(jnp.concatenate(head_outs, axis=1))

    # concat batches along sublanes -> (B*T, D); ONE Wo matmul for everything.
    attn = jnp.concatenate(batch_outs, axis=0)
    x1 = x + jnp.dot(attn, wo_ref[...],
                     preferred_element_type=jnp.float32) + bo_ref[...]

    # ---------- sublayer 1: pre-LN position-wise feed-forward + residual ----
    xn1 = _layernorm(x1, ln1_g_ref[...], ln1_b_ref[...], lane_mask, d_model, eps)
    h1 = jnp.dot(xn1, w1_ref[...],
                 preferred_element_type=jnp.float32) + b1_ref[...]
    h1 = jnp.maximum(h1, 0.0)
    ff = jnp.dot(h1, w2_ref[...],
                 preferred_element_type=jnp.float32) + b2_ref[...]

    o_ref[...] = x1 + ff                            # lane-dense unmasked store


# ----------------------------- wrapper ----------------------------------------
def encoder_layer_forward(p, x, mask):
    """x: (B, T, D) f32; mask: (B, 1, T) or (B, T, T), nonzero == attend."""
    B, T, D = x.shape
    scale = 1.0 / (D_K ** 0.5)

    def pad2(w, r, c):
        return jnp.pad(w, ((0, r - w.shape[0]), (0, c - w.shape[1])))

    def padrow(v, c):
        return jnp.pad(v.reshape(1, -1), ((0, 0), (0, c - v.shape[0])))

    # Fuse QKV weights once; fold attention scale into Q; zero-pad to 128 lanes.
    wqkv = jnp.concatenate([p["wq"] * scale, p["wk"], p["wv"]], axis=1)  # (D,3D)
    bqkv = jnp.concatenate([p["bq"] * scale, p["bk"], p["bv"]])          # (3D,)
    wqkv_p = pad2(wqkv, D_PAD, D_PAD)
    bqkv_p = padrow(bqkv, D_PAD)
    wo_p = pad2(p["wo"], D, D_PAD)          # contract over real D, 128-lane out
    bo_p = padrow(p["bo"], D_PAD)
    w1_p = pad2(p["w1"], D_PAD, F_PAD)
    b1_p = padrow(p["b1"], F_PAD)
    w2_p = pad2(p["w2"], F_PAD, D_PAD)
    b2_p = padrow(p["b2"], D_PAD)
    ln0_g = padrow(p["ln0_g"], D_PAD)
    ln0_b = padrow(p["ln0_b"], D_PAD)
    ln1_g = padrow(p["ln1_g"], D_PAD)
    ln1_b = padrow(p["ln1_b"], D_PAD)

    x_p = jnp.pad(x.reshape(B * T, D), ((0, 0), (0, D_PAD - D)))

    # Precompute the additive mask: 0 where attended, -1e9 where masked.
    add_mask = jnp.broadcast_to(
        jnp.where(mask.astype(jnp.float32) == 0.0,
                  jnp.float32(-1e9), jnp.float32(0.0)),
        (B, T, T))

    kernel = functools.partial(
        _encoder_layer_kernel, batch=B, seq=T,
        n_heads=N_HEADS, d_k=D_K, d_model=D, eps=EPS)

    out = pl.pallas_call(
        kernel,
        out_shape=jax.ShapeDtypeStruct((B * T, D_PAD), jnp.float32),
    )(
        x_p, add_mask,
        ln0_g, ln0_b,
        wqkv_p, bqkv_p, wo_p, bo_p,
        ln1_g, ln1_b,
        w1_p, b1_p, w2_p, b2_p,
    )
    return out[:, :D].reshape(B, T, D)


# ----------------------------- parameter init --------------------------------
def _init_linear(key, din, dout):
    k1, k2 = jax.random.split(key)
    bound = 1.0 / (din ** 0.5)
    w = jax.random.uniform(k1, (din, dout), jnp.float32, -bound, bound)
    b = jax.random.uniform(k2, (dout,), jnp.float32, -bound, bound)
    return w, b


def init_params(key):
    k_q, k_k, k_v, k_o, k_f1, k_f2 = jax.random.split(key, 6)
    wq, bq = _init_linear(k_q, D_MODEL, D_MODEL)
    wk, bk = _init_linear(k_k, D_MODEL, D_MODEL)
    wv, bv = _init_linear(k_v, D_MODEL, D_MODEL)
    wo, bo = _init_linear(k_o, D_MODEL, D_MODEL)
    w1, b1 = _init_linear(k_f1, D_MODEL, D_FF)
    w2, b2 = _init_linear(k_f2, D_FF, D_MODEL)
    return {
        "wq": wq, "bq": bq, "wk": wk, "bk": bk, "wv": wv, "bv": bv,
        "wo": wo, "bo": bo, "w1": w1, "b1": b1, "w2": w2, "b2": b2,
        "ln0_g": jnp.ones((D_MODEL,), jnp.float32),
        "ln0_b": jnp.zeros((D_MODEL,), jnp.float32),
        "ln1_g": jnp.ones((D_MODEL,), jnp.float32),
        "ln1_b": jnp.zeros((D_MODEL,), jnp.float32),
    }


# ----------------------------- main -------------------------------------------
if __name__ == "__main__":
    B, T = 2, 8
    key = jax.random.PRNGKey(0)
    key, kp, kx = jax.random.split(key, 3)

    params = init_params(kp)
    x = jax.random.normal(kx, (B, T, D_MODEL), jnp.float32)
    # (B, 1, T) padding mask (all positions valid), as in the reference Encoder.
    mask = jnp.ones((B, 1, T), jnp.float32)

    out = encoder_layer_forward(params, x, mask)
    out = jax.block_until_ready(out)
    assert out.shape == (B, T, D_MODEL)
    assert jnp.all(jnp.isfinite(out))
    print("KERNEL_OK")
</pallas_src>

<mosaic_0001>
module attributes {stable_mosaic.version = 11 : i64} {
  func.func @_encoder_layer_kernel(%arg0: memref<16x128xf32, #tpu.memory_space<vmem>>, %arg1: memref<2x8x8xf32, #tpu.memory_space<vmem>>, %arg2: memref<1x128xf32, #tpu.memory_space<vmem>>, %arg3: memref<1x128xf32, #tpu.memory_space<vmem>>, %arg4: memref<128x128xf32, #tpu.memory_space<vmem>>, %arg5: memref<1x128xf32, #tpu.memory_space<vmem>>, %arg6: memref<32x128xf32, #tpu.memory_space<vmem>>, %arg7: memref<1x128xf32, #tpu.memory_space<vmem>>, %arg8: memref<1x128xf32, #tpu.memory_space<vmem>>, %arg9: memref<1x128xf32, #tpu.memory_space<vmem>>, %arg10: memref<128x128xf32, #tpu.memory_space<vmem>>, %arg11: memref<1x128xf32, #tpu.memory_space<vmem>>, %arg12: memref<128x128xf32, #tpu.memory_space<vmem>>, %arg13: memref<1x128xf32, #tpu.memory_space<vmem>>, %arg14: memref<16x128xf32, #tpu.memory_space<vmem>>) attributes {dimension_semantics = [], scalar_prefetch = 0 : i64, scratch_operands = 0 : i64, tpu.core_type = #tpu.core_type<tc>} {
    %c0 = arith.constant 0 : index
    %c0_0 = arith.constant 0 : index
    %0 = vector.load %arg0[%c0, %c0_0] : memref<16x128xf32, #tpu.memory_space<vmem>>, vector<16x128xf32>
    %1 = tpu.iota {dimensions = array<i32: 1>} : vector<1x128xi32>
    %c32_i32 = arith.constant 32 : i32
    %2 = vector.broadcast %c32_i32 : i32 to vector<1x128xi32>
    %3 = arith.cmpi slt, %1, %2 : vector<1x128xi32>
    %4 = arith.extui %3 : vector<1x128xi1> to vector<1x128xi32>
    %5 = arith.sitofp %4 : vector<1x128xi32> to vector<1x128xf32>
    %c0_1 = arith.constant 0 : index
    %c0_2 = arith.constant 0 : index
    %6 = vector.load %arg2[%c0_1, %c0_2] : memref<1x128xf32, #tpu.memory_space<vmem>>, vector<1x128xf32>
    %c0_3 = arith.constant 0 : index
    %c0_4 = arith.constant 0 : index
    %7 = vector.load %arg3[%c0_3, %c0_4] : memref<1x128xf32, #tpu.memory_space<vmem>>, vector<1x128xf32>
    %cst = arith.constant dense<0.000000e+00> : vector<16xf32>
    %8 = vector.multi_reduction <add>, %0, %cst [1] : vector<16x128xf32> to vector<16xf32>
    %9 = vector.shape_cast %8 : vector<16xf32> to vector<16x1xf32>
    %cst_5 = arith.constant 3.125000e-02 : f32
    %10 = vector.broadcast %cst_5 : f32 to vector<16x1xf32>
    %11 = arith.mulf %9, %10 : vector<16x1xf32>
    %12 = vector.broadcast %11 : vector<16x1xf32> to vector<16x128xf32>
    %13 = arith.subf %0, %12 : vector<16x128xf32>
    %14 = vector.broadcast %5 : vector<1x128xf32> to vector<16x128xf32>
    %15 = arith.mulf %13, %14 : vector<16x128xf32>
    %16 = arith.mulf %15, %15 : vector<16x128xf32>
    %cst_6 = arith.constant dense<0.000000e+00> : vector<16xf32>
    %17 = vector.multi_reduction <add>, %16, %cst_6 [1] : vector<16x128xf32> to vector<16xf32>
    %18 = vector.shape_cast %17 : vector<16xf32> to vector<16x1xf32>
    %cst_7 = arith.constant 0.0322580636 : f32
    %19 = vector.broadcast %cst_7 : f32 to vector<16x1xf32>
    %20 = arith.mulf %18, %19 : vector<16x1xf32>
    %cst_8 = arith.constant 9.99999997E-7 : f32
    %21 = vector.broadcast %cst_8 : f32 to vector<16x1xf32>
    %22 = arith.addf %20, %21 : vector<16x1xf32>
    %23 = math.rsqrt %22 : vector<16x1xf32>
    %24 = vector.broadcast %23 : vector<16x1xf32> to vector<16x128xf32>
    %25 = arith.mulf %15, %24 : vector<16x128xf32>
    %26 = vector.broadcast %6 : vector<1x128xf32> to vector<16x128xf32>
    %27 = arith.mulf %25, %26 : vector<16x128xf32>
    %28 = vector.broadcast %7 : vector<1x128xf32> to vector<16x128xf32>
    %29 = arith.addf %27, %28 : vector<16x128xf32>
    %c0_9 = arith.constant 0 : index
    %c0_10 = arith.constant 0 : index
    %30 = vector.load %arg4[%c0_9, %c0_10] : memref<128x128xf32, #tpu.memory_space<vmem>>, vector<128x128xf32>
    %cst_11 = arith.constant dense<0.000000e+00> : vector<16x128xf32>
    %31 = tpu.matmul %29, %30, %cst_11 {dimension_numbers = #tpu.dot_dimension_numbers<[1], [0], [0], [1], [0, 0, 1, 1], [], []>} : vector<16x128xf32>, vector<128x128xf32>, vector<16x128xf32> -> vector<16x128xf32>
    %c0_12 = arith.constant 0 : index
    %c0_13 = arith.constant 0 : index
    %32 = vector.load %arg5[%c0_12, %c0_13] : memref<1x128xf32, #tpu.memory_space<vmem>>, vector<1x128xf32>
    %33 = vector.broadcast %32 : vector<1x128xf32> to vector<16x128xf32>
    %34 = arith.addf %31, %33 : vector<16x128xf32>
    %c0_14 = arith.constant 0 : index
    %c0_15 = arith.constant 0 : index
    %c0_16 = arith.constant 0 : index
    %35 = vector.load %arg1[%c0_14, %c0_15, %c0_16] : memref<2x8x8xf32, #tpu.memory_space<vmem>>, vector<1x8x8xf32>
    %36 = vector.shape_cast %35 : vector<1x8x8xf32> to vector<8x8xf32>
    %37 = vector.extract_strided_slice %34 {offsets = [0, 0], sizes = [8, 8], strides = [1, 1]} : vector<16x128xf32> to vector<8x8xf32>
    %38 = vector.extract_strided_slice %34 {offsets = [0, 32], sizes = [8, 8], strides = [1, 1]} : vector<16x128xf32> to vector<8x8xf32>
    %39 = vector.extract_strided_slice %34 {offsets = [0, 64], sizes = [8, 8], strides = [1, 1]} : vector<16x128xf32> to vector<8x8xf32>
    %cst_17 = arith.constant dense<0.000000e+00> : vector<8x8xf32>
    %40 = tpu.matmul %37, %38, %cst_17 {dimension_numbers = #tpu.dot_dimension_numbers<[1], [1], [0], [0], [0, 0, 1, 0], [], []>} : vector<8x8xf32>, vector<8x8xf32>, vector<8x8xf32> -> vector<8x8xf32>
    %41 = arith.addf %40, %36 : vector<8x8xf32>
    %cst_18 = arith.constant dense<0xFF800000> : vector<8xf32>
    %42 = vector.multi_reduction <maximumf>, %41, %cst_18 [1] : vector<8x8xf32> to vector<8xf32>
    %43 = vector.shape_cast %42 : vector<8xf32> to vector<8x1xf32>
    %44 = vector.broadcast %43 : vector<8x1xf32> to vector<8x8xf32>
    %45 = arith.subf %41, %44 : vector<8x8xf32>
    %46 = math.exp %45 : vector<8x8xf32>
    %cst_19 = arith.constant dense<0.000000e+00> : vector<8xf32>
    %47 = vector.multi_reduction <add>, %46, %cst_19 [1] : vector<8x8xf32> to vector<8xf32>
    %48 = vector.shape_cast %47 : vector<8xf32> to vector<8x1xf32>
    %49 = tpu.reciprocal %48 {approx = true} : vector<8x1xf32> -> vector<8x1xf32>
    %50 = vector.broadcast %49 : vector<8x1xf32> to vector<8x8xf32>
    %51 = arith.mulf %46, %50 : vector<8x8xf32>
    %cst_20 = arith.constant dense<0.000000e+00> : vector<8x8xf32>
    %52 = tpu.matmul %51, %39, %cst_20 {dimension_numbers = #tpu.dot_dimension_numbers<[1], [0], [0], [1], [0, 0, 1, 1], [], []>} : vector<8x8xf32>, vector<8x8xf32>, vector<8x8xf32> -> vector<8x8xf32>
    %53 = vector.extract_strided_slice %34 {offsets = [0, 8], sizes = [8, 8], strides = [1, 1]} : vector<16x128xf32> to vector<8x8xf32>
    %54 = vector.extract_strided_slice %34 {offsets = [0, 40], sizes = [8, 8], strides = [1, 1]} : vector<16x128xf32> to vector<8x8xf32>
    %55 = vector.extract_strided_slice %34 {offsets = [0, 72], sizes = [8, 8], strides = [1, 1]} : vector<16x128xf32> to vector<8x8xf32>
    %cst_21 = arith.constant dense<0.000000e+00> : vector<8x8xf32>
    %56 = tpu.matmul %53, %54, %cst_21 {dimension_numbers = #tpu.dot_dimension_numbers<[1], [1], [0], [0], [0, 0, 1, 0], [], []>} : vector<8x8xf32>, vector<8x8xf32>, vector<8x8xf32> -> vector<8x8xf32>
    %57 = arith.addf %56, %36 : vector<8x8xf32>
    %cst_22 = arith.constant dense<0xFF800000> : vector<8xf32>
    %58 = vector.multi_reduction <maximumf>, %57, %cst_22 [1] : vector<8x8xf32> to vector<8xf32>
    %59 = vector.shape_cast %58 : vector<8xf32> to vector<8x1xf32>
    %60 = vector.broadcast %59 : vector<8x1xf32> to vector<8x8xf32>
    %61 = arith.subf %57, %60 : vector<8x8xf32>
    %62 = math.exp %61 : vector<8x8xf32>
    %cst_23 = arith.constant dense<0.000000e+00> : vector<8xf32>
    %63 = vector.multi_reduction <add>, %62, %cst_23 [1] : vector<8x8xf32> to vector<8xf32>
    %64 = vector.shape_cast %63 : vector<8xf32> to vector<8x1xf32>
    %65 = tpu.reciprocal %64 {approx = true} : vector<8x1xf32> -> vector<8x1xf32>
    %66 = vector.broadcast %65 : vector<8x1xf32> to vector<8x8xf32>
    %67 = arith.mulf %62, %66 : vector<8x8xf32>
    %cst_24 = arith.constant dense<0.000000e+00> : vector<8x8xf32>
    %68 = tpu.matmul %67, %55, %cst_24 {dimension_numbers = #tpu.dot_dimension_numbers<[1], [0], [0], [1], [0, 0, 1, 1], [], []>} : vector<8x8xf32>, vector<8x8xf32>, vector<8x8xf32> -> vector<8x8xf32>
    %69 = vector.extract_strided_slice %34 {offsets = [0, 16], sizes = [8, 8], strides = [1, 1]} : vector<16x128xf32> to vector<8x8xf32>
    %70 = vector.extract_strided_slice %34 {offsets = [0, 48], sizes = [8, 8], strides = [1, 1]} : vector<16x128xf32> to vector<8x8xf32>
    %71 = vector.extract_strided_slice %34 {offsets = [0, 80], sizes = [8, 8], strides = [1, 1]} : vector<16x128xf32> to vector<8x8xf32>
    %cst_25 = arith.constant dense<0.000000e+00> : vector<8x8xf32>
    %72 = tpu.matmul %69, %70, %cst_25 {dimension_numbers = #tpu.dot_dimension_numbers<[1], [1], [0], [0], [0, 0, 1, 0], [], []>} : vector<8x8xf32>, vector<8x8xf32>, vector<8x8xf32> -> vector<8x8xf32>
    %73 = arith.addf %72, %36 : vector<8x8xf32>
    %cst_26 = arith.constant dense<0xFF800000> : vector<8xf32>
    %74 = vector.multi_reduction <maximumf>, %73, %cst_26 [1] : vector<8x8xf32> to vector<8xf32>
    %75 = vector.shape_cast %74 : vector<8xf32> to vector<8x1xf32>
    %76 = vector.broadcast %75 : vector<8x1xf32> to vector<8x8xf32>
    %77 = arith.subf %73, %76 : vector<8x8xf32>
    %78 = math.exp %77 : vector<8x8xf32>
    %cst_27 = arith.constant dense<0.000000e+00> : vector<8xf32>
    %79 = vector.multi_reduction <add>, %78, %cst_27 [1] : vector<8x8xf32> to vector<8xf32>
    %80 = vector.shape_cast %79 : vector<8xf32> to vector<8x1xf32>
    %81 = tpu.reciprocal %80 {approx = true} : vector<8x1xf32> -> vector<8x1xf32>
    %82 = vector.broadcast %81 : vector<8x1xf32> to vector<8x8xf32>
    %83 = arith.mulf %78, %82 : vector<8x8xf32>
    %cst_28 = arith.constant dense<0.000000e+00> : vector<8x8xf32>
    %84 = tpu.matmul %83, %71, %cst_28 {dimension_numbers = #tpu.dot_dimension_numbers<[1], [0], [0], [1], [0, 0, 1, 1], [], []>} : vector<8x8xf32>, vector<8x8xf32>, vector<8x8xf32> -> vector<8x8xf32>
    %85 = vector.extract_strided_slice %34 {offsets = [0, 24], sizes = [8, 8], strides = [1, 1]} : vector<16x128xf32> to vector<8x8xf32>
    %86 = vector.extract_strided_slice %34 {offsets = [0, 56], sizes = [8, 8], strides = [1, 1]} : vector<16x128xf32> to vector<8x8xf32>
    %87 = vector.extract_strided_slice %34 {offsets = [0, 88], sizes = [8, 8], strides = [1, 1]} : vector<16x128xf32> to vector<8x8xf32>
    %cst_29 = arith.constant dense<0.000000e+00> : vector<8x8xf32>
    %88 = tpu.matmul %85, %86, %cst_29 {dimension_numbers = #tpu.dot_dimension_numbers<[1], [1], [0], [0], [0, 0, 1, 0], [], []>} : vector<8x8xf32>, vector<8x8xf32>, vector<8x8xf32> -> vector<8x8xf32>
    %89 = arith.addf %88, %36 : vector<8x8xf32>
    %cst_30 = arith.constant dense<0xFF800000> : vector<8xf32>
    %90 = vector.multi_reduction <maximumf>, %89, %cst_30 [1] : vector<8x8xf32> to vector<8xf32>
    %91 = vector.shape_cast %90 : vector<8xf32> to vector<8x1xf32>
    %92 = vector.broadcast %91 : vector<8x1xf32> to vector<8x8xf32>
    %93 = arith.subf %89, %92 : vector<8x8xf32>
    %94 = math.exp %93 : vector<8x8xf32>
    %cst_31 = arith.constant dense<0.000000e+00> : vector<8xf32>
    %95 = vector.multi_reduction <add>, %94, %cst_31 [1] : vector<8x8xf32> to vector<8xf32>
    %96 = vector.shape_cast %95 : vector<8xf32> to vector<8x1xf32>
    %97 = tpu.reciprocal %96 {approx = true} : vector<8x1xf32> -> vector<8x1xf32>
    %98 = vector.broadcast %97 : vector<8x1xf32> to vector<8x8xf32>
    %99 = arith.mulf %94, %98 : vector<8x8xf32>
    %cst_32 = arith.constant dense<0.000000e+00> : vector<8x8xf32>
    %100 = tpu.matmul %99, %87, %cst_32 {dimension_numbers = #tpu.dot_dimension_numbers<[1], [0], [0], [1], [0, 0, 1, 1], [], []>} : vector<8x8xf32>, vector<8x8xf32>, vector<8x8xf32> -> vector<8x8xf32>
    %101 = tpu.concatenate %52, %68, %84, %100 in 1 : vector<8x8xf32>, vector<8x8xf32>, vector<8x8xf32>, vector<8x8xf32> -> vector<8x32xf32>
    %c1 = arith.constant 1 : index
    %c0_33 = arith.constant 0 : index
    %c0_34 = arith.constant 0 : index
    %102 = vector.load %arg1[%c1, %c0_33, %c0_34] : memref<2x8x8xf32, #tpu.memory_space<vmem>>, vector<1x8x8xf32>
    %103 = vector.shape_cast %102 : vector<1x8x8xf32> to vector<8x8xf32>
    %104 = vector.extract_strided_slice %34 {offsets = [8, 0], sizes = [8, 8], strides = [1, 1]} : vector<16x128xf32> to vector<8x8xf32>
    %105 = vector.extract_strided_slice %34 {offsets = [8, 32], sizes = [8, 8], strides = [1, 1]} : vector<16x128xf32> to vector<8x8xf32>
    %106 = vector.extract_strided_slice %34 {offsets = [8, 64], sizes = [8, 8], strides = [1, 1]} : vector<16x128xf32> to vector<8x8xf32>
    %cst_35 = arith.constant dense<0.000000e+00> : vector<8x8xf32>
    %107 = tpu.matmul %104, %105, %cst_35 {dimension_numbers = #tpu.dot_dimension_numbers<[1], [1], [0], [0], [0, 0, 1, 0], [], []>} : vector<8x8xf32>, vector<8x8xf32>, vector<8x8xf32> -> vector<8x8xf32>
    %108 = arith.addf %107, %103 : vector<8x8xf32>
    %cst_36 = arith.constant dense<0xFF800000> : vector<8xf32>
    %109 = vector.multi_reduction <maximumf>, %108, %cst_36 [1] : vector<8x8xf32> to vector<8xf32>
    %110 = vector.shape_cast %109 : vector<8xf32> to vector<8x1xf32>
    %111 = vector.broadcast %110 : vector<8x1xf32> to vector<8x8xf32>
    %112 = arith.subf %108, %111 : vector<8x8xf32>
    %113 = math.exp %112 : vector<8x8xf32>
    %cst_37 = arith.constant dense<0.000000e+00> : vector<8xf32>
    %114 = vector.multi_reduction <add>, %113, %cst_37 [1] : vector<8x8xf32> to vector<8xf32>
    %115 = vector.shape_cast %114 : vector<8xf32> to vector<8x1xf32>
    %116 = tpu.reciprocal %115 {approx = true} : vector<8x1xf32> -> vector<8x1xf32>
    %117 = vector.broadcast %116 : vector<8x1xf32> to vector<8x8xf32>
    %118 = arith.mulf %113, %117 : vector<8x8xf32>
    %cst_38 = arith.constant dense<0.000000e+00> : vector<8x8xf32>
    %119 = tpu.matmul %118, %106, %cst_38 {dimension_numbers = #tpu.dot_dimension_numbers<[1], [0], [0], [1], [0, 0, 1, 1], [], []>} : vector<8x8xf32>, vector<8x8xf32>, vector<8x8xf32> -> vector<8x8xf32>
    %120 = vector.extract_strided_slice %34 {offsets = [8, 8], sizes = [8, 8], strides = [1, 1]} : vector<16x128xf32> to vector<8x8xf32>
    %121 = vector.extract_strided_slice %34 {offsets = [8, 40], sizes = [8, 8], strides = [1, 1]} : vector<16x128xf32> to vector<8x8xf32>
    %122 = vector.extract_strided_slice %34 {offsets = [8, 72], sizes = [8, 8], strides = [1, 1]} : vector<16x128xf32> to vector<8x8xf32>
    %cst_39 = arith.constant dense<0.000000e+00> : vector<8x8xf32>
    %123 = tpu.matmul %120, %121, %cst_39 {dimension_numbers = #tpu.dot_dimension_numbers<[1], [1], [0], [0], [0, 0, 1, 0], [], []>} : vector<8x8xf32>, vector<8x8xf32>, vector<8x8xf32> -> vector<8x8xf32>
    %124 = arith.addf %123, %103 : vector<8x8xf32>
    %cst_40 = arith.constant dense<0xFF800000> : vector<8xf32>
    %125 = vector.multi_reduction <maximumf>, %124, %cst_40 [1] : vector<8x8xf32> to vector<8xf32>
    %126 = vector.shape_cast %125 : vector<8xf32> to vector<8x1xf32>
    %127 = vector.broadcast %126 : vector<8x1xf32> to vector<8x8xf32>
    %128 = arith.subf %124, %127 : vector<8x8xf32>
    %129 = math.exp %128 : vector<8x8xf32>
    %cst_41 = arith.constant dense<0.000000e+00> : vector<8xf32>
    %130 = vector.multi_reduction <add>, %129, %cst_41 [1] : vector<8x8xf32> to vector<8xf32>
    %131 = vector.shape_cast %130 : vector<8xf32> to vector<8x1xf32>
    %132 = tpu.reciprocal %131 {approx = true} : vector<8x1xf32> -> vector<8x1xf32>
    %133 = vector.broadcast %132 : vector<8x1xf32> to vector<8x8xf32>
    %134 = arith.mulf %129, %133 : vector<8x8xf32>
    %cst_42 = arith.constant dense<0.000000e+00> : vector<8x8xf32>
    %135 = tpu.matmul %134, %122, %cst_42 {dimension_numbers = #tpu.dot_dimension_numbers<[1], [0], [0], [1], [0, 0, 1, 1], [], []>} : vector<8x8xf32>, vector<8x8xf32>, vector<8x8xf32> -> vector<8x8xf32>
    %136 = vector.extract_strided_slice %34 {offsets = [8, 16], sizes = [8, 8], strides = [1, 1]} : vector<16x128xf32> to vector<8x8xf32>
    %137 = vector.extract_strided_slice %34 {offsets = [8, 48], sizes = [8, 8], strides = [1, 1]} : vector<16x128xf32> to vector<8x8xf32>
    %138 = vector.extract_strided_slice %34 {offsets = [8, 80], sizes = [8, 8], strides = [1, 1]} : vector<16x128xf32> to vector<8x8xf32>
    %cst_43 = arith.constant dense<0.000000e+00> : vector<8x8xf32>
    %139 = tpu.matmul %136, %137, %cst_43 {dimension_numbers = #tpu.dot_dimension_numbers<[1], [1], [0], [0], [0, 0, 1, 0], [], []>} : vector<8x8xf32>, vector<8x8xf32>, vector<8x8xf32> -> vector<8x8xf32>
    %140 = arith.addf %139, %103 : vector<8x8xf32>
    %cst_44 = arith.constant dense<0xFF800000> : vector<8xf32>
    %141 = vector.multi_reduction <maximumf>, %140, %cst_44 [1] : vector<8x8xf32> to vector<8xf32>
    %142 = vector.shape_cast %141 : vector<8xf32> to vector<8x1xf32>
    %143 = vector.broadcast %142 : vector<8x1xf32> to vector<8x8xf32>
    %144 = arith.subf %140, %143 : vector<8x8xf32>
    %145 = math.exp %144 : vector<8x8xf32>
    %cst_45 = arith.constant dense<0.000000e+00> : vector<8xf32>
    %146 = vector.multi_reduction <add>, %145, %cst_45 [1] : vector<8x8xf32> to vector<8xf32>
    %147 = vector.shape_cast %146 : vector<8xf32> to vector<8x1xf32>
    %148 = tpu.reciprocal %147 {approx = true} : vector<8x1xf32> -> vector<8x1xf32>
    %149 = vector.broadcast %148 : vector<8x1xf32> to vector<8x8xf32>
    %150 = arith.mulf %145, %149 : vector<8x8xf32>
    %cst_46 = arith.constant dense<0.000000e+00> : vector<8x8xf32>
    %151 = tpu.matmul %150, %138, %cst_46 {dimension_numbers = #tpu.dot_dimension_numbers<[1], [0], [0], [1], [0, 0, 1, 1], [], []>} : vector<8x8xf32>, vector<8x8xf32>, vector<8x8xf32> -> vector<8x8xf32>
    %152 = vector.extract_strided_slice %34 {offsets = [8, 24], sizes = [8, 8], strides = [1, 1]} : vector<16x128xf32> to vector<8x8xf32>
    %153 = vector.extract_strided_slice %34 {offsets = [8, 56], sizes = [8, 8], strides = [1, 1]} : vector<16x128xf32> to vector<8x8xf32>
    %154 = vector.extract_strided_slice %34 {offsets = [8, 88], sizes = [8, 8], strides = [1, 1]} : vector<16x128xf32> to vector<8x8xf32>
    %cst_47 = arith.constant dense<0.000000e+00> : vector<8x8xf32>
    %155 = tpu.matmul %152, %153, %cst_47 {dimension_numbers = #tpu.dot_dimension_numbers<[1], [1], [0], [0], [0, 0, 1, 0], [], []>} : vector<8x8xf32>, vector<8x8xf32>, vector<8x8xf32> -> vector<8x8xf32>
    %156 = arith.addf %155, %103 : vector<8x8xf32>
    %cst_48 = arith.constant dense<0xFF800000> : vector<8xf32>
    %157 = vector.multi_reduction <maximumf>, %156, %cst_48 [1] : vector<8x8xf32> to vector<8xf32>
    %158 = vector.shape_cast %157 : vector<8xf32> to vector<8x1xf32>
    %159 = vector.broadcast %158 : vector<8x1xf32> to vector<8x8xf32>
    %160 = arith.subf %156, %159 : vector<8x8xf32>
    %161 = math.exp %160 : vector<8x8xf32>
    %cst_49 = arith.constant dense<0.000000e+00> : vector<8xf32>
    %162 = vector.multi_reduction <add>, %161, %cst_49 [1] : vector<8x8xf32> to vector<8xf32>
    %163 = vector.shape_cast %162 : vector<8xf32> to vector<8x1xf32>
    %164 = tpu.reciprocal %163 {approx = true} : vector<8x1xf32> -> vector<8x1xf32>
    %165 = vector.broadcast %164 : vector<8x1xf32> to vector<8x8xf32>
    %166 = arith.mulf %161, %165 : vector<8x8xf32>
    %cst_50 = arith.constant dense<0.000000e+00> : vector<8x8xf32>
    %167 = tpu.matmul %166, %154, %cst_50 {dimension_numbers = #tpu.dot_dimension_numbers<[1], [0], [0], [1], [0, 0, 1, 1], [], []>} : vector<8x8xf32>, vector<8x8xf32>, vector<8x8xf32> -> vector<8x8xf32>
    %168 = tpu.concatenate %119, %135, %151, %167 in 1 : vector<8x8xf32>, vector<8x8xf32>, vector<8x8xf32>, vector<8x8xf32> -> vector<8x32xf32>
    %169 = tpu.concatenate %101, %168 in 0 : vector<8x32xf32>, vector<8x32xf32> -> vector<16x32xf32>
    %c0_51 = arith.constant 0 : index
    %c0_52 = arith.constant 0 : index
    %170 = vector.load %arg6[%c0_51, %c0_52] : memref<32x128xf32, #tpu.memory_space<vmem>>, vector<32x128xf32>
    %cst_53 = arith.constant dense<0.000000e+00> : vector<16x128xf32>
    %171 = tpu.matmul %169, %170, %cst_53 {dimension_numbers = #tpu.dot_dimension_numbers<[1], [0], [0], [1], [0, 0, 1, 1], [], []>} : vector<16x32xf32>, vector<32x128xf32>, vector<16x128xf32> -> vector<16x128xf32>
    %172 = arith.addf %0, %171 : vector<16x128xf32>
    %c0_54 = arith.constant 0 : index
    %c0_55 = arith.constant 0 : index
    %173 = vector.load %arg7[%c0_54, %c0_55] : memref<1x128xf32, #tpu.memory_space<vmem>>, vector<1x128xf32>
    %174 = vector.broadcast %173 : vector<1x128xf32> to vector<16x128xf32>
    %175 = arith.addf %172, %174 : vector<16x128xf32>
    %c0_56 = arith.constant 0 : index
    %c0_57 = arith.constant 0 : index
    %176 = vector.load %arg8[%c0_56, %c0_57] : memref<1x128xf32, #tpu.memory_space<vmem>>, vector<1x128xf32>
    %c0_58 = arith.constant 0 : index
    %c0_59 = arith.constant 0 : index
    %177 = vector.load %arg9[%c0_58, %c0_59] : memref<1x128xf32, #tpu.memory_space<vmem>>, vector<1x128xf32>
    %cst_60 = arith.constant dense<0.000000e+00> : vector<16xf32>
    %178 = vector.multi_reduction <add>, %175, %cst_60 [1] : vector<16x128xf32> to vector<16xf32>
    %179 = vector.shape_cast %178 : vector<16xf32> to vector<16x1xf32>
    %cst_61 = arith.constant 3.125000e-02 : f32
    %180 = vector.broadcast %cst_61 : f32 to vector<16x1xf32>
    %181 = arith.mulf %179, %180 : vector<16x1xf32>
    %182 = vector.broadcast %181 : vector<16x1xf32> to vector<16x128xf32>
    %183 = arith.subf %175, %182 : vector<16x128xf32>
    %184 = vector.broadcast %5 : vector<1x128xf32> to vector<16x128xf32>
    %185 = arith.mulf %183, %184 : vector<16x128xf32>
    %186 = arith.mulf %185, %185 : vector<16x128xf32>
    %cst_62 = arith.constant dense<0.000000e+00> : vector<16xf32>
    %187 = vector.multi_reduction <add>, %186, %cst_62 [1] : vector<16x128xf32> to vector<16xf32>
    %188 = vector.shape_cast %187 : vector<16xf32> to vector<16x1xf32>
    %cst_63 = arith.constant 0.0322580636 : f32
    %189 = vector.broadcast %cst_63 : f32 to vector<16x1xf32>
    %190 = arith.mulf %188, %189 : vector<16x1xf32>
    %cst_64 = arith.constant 9.99999997E-7 : f32
    %191 = vector.broadcast %cst_64 : f32 to vector<16x1xf32>
    %192 = arith.addf %190, %191 : vector<16x1xf32>
    %193 = math.rsqrt %192 : vector<16x1xf32>
    %194 = vector.broadcast %193 : vector<16x1xf32> to vector<16x128xf32>
    %195 = arith.mulf %185, %194 : vector<16x128xf32>
    %196 = vector.broadcast %176 : vector<1x128xf32> to vector<16x128xf32>
    %197 = arith.mulf %195, %196 : vector<16x128xf32>
    %198 = vector.broadcast %177 : vector<1x128xf32> to vector<16x128xf32>
    %199 = arith.addf %197, %198 : vector<16x128xf32>
    %c0_65 = arith.constant 0 : index
    %c0_66 = arith.constant 0 : index
    %200 = vector.load %arg10[%c0_65, %c0_66] : memref<128x128xf32, #tpu.memory_space<vmem>>, vector<128x128xf32>
    %cst_67 = arith.constant dense<0.000000e+00> : vector<16x128xf32>
    %201 = tpu.matmul %199, %200, %cst_67 {dimension_numbers = #tpu.dot_dimension_numbers<[1], [0], [0], [1], [0, 0, 1, 1], [], []>} : vector<16x128xf32>, vector<128x128xf32>, vector<16x128xf32> -> vector<16x128xf32>
    %c0_68 = arith.constant 0 : index
    %c0_69 = arith.constant 0 : index
    %202 = vector.load %arg11[%c0_68, %c0_69] : memref<1x128xf32, #tpu.memory_space<vmem>>, vector<1x128xf32>
    %203 = vector.broadcast %202 : vector<1x128xf32> to vector<16x128xf32>
    %204 = arith.addf %201, %203 : vector<16x128xf32>
    %cst_70 = arith.constant 0.000000e+00 : f32
    %205 = vector.broadcast %cst_70 : f32 to vector<16x128xf32>
    %206 = arith.maximumf %204, %205 : vector<16x128xf32>
    %c0_71 = arith.constant 0 : index
    %c0_72 = arith.constant 0 : index
    %207 = vector.load %arg12[%c0_71, %c0_72] : memref<128x128xf32, #tpu.memory_space<vmem>>, vector<128x128xf32>
    %cst_73 = arith.constant dense<0.000000e+00> : vector<16x128xf32>
    %208 = tpu.matmul %206, %207, %cst_73 {dimension_numbers = #tpu.dot_dimension_numbers<[1], [0], [0], [1], [0, 0, 1, 1], [], []>} : vector<16x128xf32>, vector<128x128xf32>, vector<16x128xf32> -> vector<16x128xf32>
    %c0_74 = arith.constant 0 : index
    %c0_75 = arith.constant 0 : index
    %209 = vector.load %arg13[%c0_74, %c0_75] : memref<1x128xf32, #tpu.memory_space<vmem>>, vector<1x128xf32>
    %210 = vector.broadcast %209 : vector<1x128xf32> to vector<16x128xf32>
    %211 = arith.addf %208, %210 : vector<16x128xf32>
    %212 = arith.addf %175, %211 : vector<16x128xf32>
    %c0_76 = arith.constant 0 : index
    %c0_77 = arith.constant 0 : index
    %213 = vector.load %arg14[%c0_76, %c0_77] : memref<16x128xf32, #tpu.memory_space<vmem>>, vector<16x128xf32>
    tpu.vector_store %arg14[%c0_76, %c0_77], %212 {strides = array<i32>} : memref<16x128xf32, #tpu.memory_space<vmem>>, vector<16x128xf32>,
    return
  }
}

</mosaic_0001>

<bundles_post_ra>
// kernel: tpu_custom_call.1
= control target key start
LH: loop header
LB: loop body
LE: loop exit
PB: predicated region body
PF: predicated region fallthrough
CT: control target
= control target key end

     0   :  { %19 = vsyncpa [#allocation3], 0  ;;  %s2898_s0 = inlined_call_operand.hbm [shape: f32[16,128], index: 0, kind: input, shape index: {}]   ;;  %s2899_s1 = inlined_call_operand.hbm [shape: f32[2,8,8], index: 1, kind: input, shape index: {}]   ;;  %s2900_s2 = inlined_call_operand.vmem [shape: f32[1,128], index: 2, kind: input, shape index: {}]   ;;  %s2901_s3 = inlined_call_operand.vmem [shape: f32[1,128], index: 3, kind: input, shape index: {}]   ;;  %s2902_s4 = inlined_call_operand.hbm [shape: f32[128,128], index: 4, kind: input, shape index: {}]   ;;  %s2903_s5 = inlined_call_operand.vmem [shape: f32[1,128], index: 5, kind: input, shape index: {}]   ;;  %s2904_s6 = inlined_call_operand.hbm [shape: f32[32,128], index: 6, kind: input, shape index: {}]   ;;  %s2905_s7 = inlined_call_operand.vmem [shape: f32[1,128], index: 7, kind: input, shape index: {}]   ;;  %s2906_s8 = inlined_call_operand.vmem [shape: f32[1,128], index: 8, kind: input, shape index: {}]   ;;  %s2907_s9 = inlined_call_operand.vmem [shape: f32[1,128], index: 9, kind: input, shape index: {}]   ;;  %s2908_s10 = inlined_call_operand.hbm [shape: f32[128,128], index: 10, kind: input, shape index: {}]   ;;  %s2909_s11 = inlined_call_operand.vmem [shape: f32[1,128], index: 11, kind: input, shape index: {}]   ;;  %s2910_s12 = inlined_call_operand.hbm [shape: f32[128,128], index: 12, kind: input, shape index: {}]   ;;  %s2911_s13 = inlined_call_operand.vmem [shape: f32[1,128], index: 13, kind: input, shape index: {}]   ;;  %s2912_s14 = inlined_call_operand.hbm [shape: f32[16,128], index: 14, kind: output, shape index: {}]  }
   0x1   :  { %20 = vsyncpa [#allocation6], 0 }
   0x2   :  { %21 = vsyncpa [#allocation9], 0 }
   0x3   :  { %22 = vsyncpa [#allocation12], 0 }
   0x4   :  { %23 = vsyncpa [#allocation4], 0  ;;  %s2529_s29 = smov [#allocation5]   ;;  %s2530_s15 = smov [#allocation8]  }
   0x5   :  { %s41_s30 = sshll.u32 %s2529_s29, 4  ;;  %s71_s16 = sshll.u32 %s2530_s15, 4  ;;  %s42_s30 = int_to_ptr.vmem [resolvable:$true] %s41_s30  ;;  %s72_s16 = int_to_ptr.vmem [resolvable:$true] %s71_s16 }
   0x6   :  { %s2387_s17 = scalar_lea.vmem %s42_s30, 256  ;;  %p2392_p1 = scmp.lt.s32.totalorder %s42_s30, %s42_s30 }
   0x7   :  { %p2388_p0 = scmp.ne.s32.totalorder %s42_s30, %s2387_s17  ;;  %p2393_p2 = scmp.lt.s32.totalorder %s2387_s17, %s2387_s17 }
   0x9   :  { %p2394_p3 = por %p2393_p2, %p2392_p1 }
   0xb   :  { %p2395_p4 = pnand %p2394_p3, %p2388_p0 }
   0xd   :  { %2398 = shalt.err (!%p2395_p4)
}
   0xe   :  { %s2531_s18 = smov 128   ;;  %s2532_s19 = smov 8  }
   0xf   :  { %47 = dma.hbm_to_vmem [thread:$0]  %s2899_s1, 256, %s42_s30, [#allocation6], %s2531_s18, %s2531_s18, %s2532_s19  }
  0x10   :  { %s2407_s22 = scalar_lea.vmem %s72_s16, 512  ;;  %p2412_p6 = scmp.lt.s32.totalorder %s72_s16, %s72_s16 }
  0x11   :  { %p2408_p5 = scmp.ne.s32.totalorder %s72_s16, %s2407_s22  ;;  %p2413_p7 = scmp.lt.s32.totalorder %s2407_s22, %s2407_s22 }
  0x13   :  { %p2414_p8 = por %p2413_p7, %p2412_p6 }
  0x15   :  { %p2415_p9 = pnand %p2414_p8, %p2408_p5 }
  0x17   :  { %2418 = shalt.err (!%p2415_p9)
}
  0x18   :  { %77 = dma.hbm_to_vmem [thread:$0]  %s2904_s6, 512, %s72_s16, [#allocation9], %s2531_s18, %s2531_s18, %s2532_s19  }
  0x19   :  { %s2533_s25 = smov [#allocation2]   ;;  %s2534_s27 = smov [#allocation7]  }
  0x1a   :  { %s29_s26 = sshll.u32 %s2533_s25, 4  ;;  %s57_s28 = sshll.u32 %s2534_s27, 4  ;;  %s30_s26 = int_to_ptr.vmem [resolvable:$true] %s29_s26  ;;  %s58_s28 = int_to_ptr.vmem [resolvable:$true] %s57_s28 }
  0x1b   :  { %s2427_s1 = scalar_lea.vmem %s30_s26, 256  ;;  %p2432_p11 = scmp.lt.s32.totalorder %s30_s26, %s30_s26 }
  0x1c   :  { %p2428_p10 = scmp.ne.s32.totalorder %s30_s26, %s2427_s1  ;;  %p2433_p12 = scmp.lt.s32.totalorder %s2427_s1, %s2427_s1 }
  0x1e   :  { %p2434_p13 = por %p2433_p12, %p2432_p11 }
  0x20   :  { %p2435_p0 = pnand %p2434_p13, %p2428_p10 }
  0x22   :  { %2438 = shalt.err (!%p2435_p0)
}
  0x23   :  { %35 = dma.hbm_to_vmem [thread:$0]  %s2898_s0, 256, %s30_s26, [#allocation3], %s2531_s18, %s2531_s18, %s2532_s19  }
  0x24   :  { %s2447_s6 = scalar_lea.vmem %s58_s28, 2048  ;;  %p2452_p2 = scmp.lt.s32.totalorder %s58_s28, %s58_s28 }
  0x25   :  { %p2448_p1 = scmp.ne.s32.totalorder %s58_s28, %s2447_s6  ;;  %p2453_p3 = scmp.lt.s32.totalorder %s2447_s6, %s2447_s6 }
  0x27   :  { %p2454_p4 = por %p2453_p3, %p2452_p2 }
  0x29   :  { %p2455_p5 = pnand %p2454_p4, %p2448_p1 }
  0x2b   :  { %2458 = shalt.err (!%p2455_p5)
}
  0x2c   :  { %63 = dma.hbm_to_vmem [thread:$0]  %s2902_s4, 2048, %s58_s28, [#allocation6], %s2531_s18, %s2531_s18, %s2532_s19  }
  0x2d   :  { %s2535_s17 = smov [#allocation10]   ;;  %s2536_s21 = smov [#allocation11]  }
  0x2e   :  { %s89_s20 = sshll.u32 %s2535_s17, 4  ;;  %s103_s22 = sshll.u32 %s2536_s21, 4  ;;  %s90_s20 = int_to_ptr.vmem [resolvable:$true] %s89_s20  ;;  %s104_s22 = int_to_ptr.vmem [resolvable:$true] %s103_s22 }
  0x2f   :  { %s2467_s0 = scalar_lea.vmem %s90_s20, 2048  ;;  %p2472_p7 = scmp.lt.s32.totalorder %s90_s20, %s90_s20 }
  0x30   :  { %p2468_p6 = scmp.ne.s32.totalorder %s90_s20, %s2467_s0  ;;  %p2473_p8 = scmp.lt.s32.totalorder %s2467_s0, %s2467_s0 }
  0x32   :  { %p2474_p9 = por %p2473_p8, %p2472_p7 }
  0x34   :  { %p2475_p10 = pnand %p2474_p9, %p2468_p6 }
  0x36   :  { %2478 = shalt.err (!%p2475_p10)
}
  0x37   :  { %95 = dma.hbm_to_vmem [thread:$0]  %s2908_s10, 2048, %s90_s20, [#allocation9], %s2531_s18, %s2531_s18, %s2532_s19  }
  0x38   :  { %s2487_s4 = scalar_lea.vmem %s104_s22, 2048  ;;  %p2492_p12 = scmp.lt.s32.totalorder %s104_s22, %s104_s22 }
  0x39   :  { %p2488_p11 = scmp.ne.s32.totalorder %s104_s22, %s2487_s4  ;;  %p2493_p13 = scmp.lt.s32.totalorder %s2487_s4, %s2487_s4 }
  0x3b   :  { %p2494_p0 = por %p2493_p13, %p2492_p12 }
  0x3d   :  { %p2495_p1 = pnand %p2494_p0, %p2488_p11 }
  0x3f   :  { %2498 = shalt.err (!%p2495_p1)
}
  0x40   :  { %109 = dma.hbm_to_vmem [thread:$0]  %s2910_s12, 2048, %s104_s22, [#allocation12], %s2531_s18, %s2531_s18, %s2532_s19  }
  0x41   :  { %2519 = dma.done.wait [#allocation3], 256  }
  0x42   :  { %2520 = vsyncadd [#allocation3], 4294967040 }
  0x43   :  { %2521 = dma.done.wait [#allocation6], 2304  }
  0x44   :  { %2522 = vsyncadd [#allocation6], 4294964992 }
  0x45   :  { %2523 = dma.done.wait [#allocation9], 2560  }
  0x46   :  { %2524 = vsyncadd [#allocation9], 4294964736 }
  0x47   :  { %2525 = dma.done.wait [#allocation12], 2048  }
  0x48   :  { %2526 = vsyncadd [#allocation12], 4294965248  ;;  %v2664_v0 = vld [vmem:[#allocation2] sm:$0xff]  ;;  %v2667_v1 = vld [vmem:[#allocation2 + $0x8] sm:$0xff]  ;;  %v2537_v2 = vmov 0.0   ;;  %v132_v5 = vlaneseq  ;;  %vm2538_vm1 = vmmov 0  }
  0x49   :  { %139 = vadd.xlane.f32.xlu0 %v2664_v0  ;;  %2154 = vmatprep.subr.mxu1 %v2537_v2  ;;  %v194_v3 = vld [vmem:[#allocation7 + $0x78] sm:$0xff]  ;;  %v193_v4 = vld [vmem:[#allocation7 + $0x70] sm:$0xff]  ;;  %v192_v18 = vld [vmem:[#allocation7 + $0x68] sm:$0xff]  ;;  %s2540_s29 = smov 88   ;;  %vm281_vm2 = vcmask 64512   ;;  %s2542_s30 = smov 120  }
  0x4a   :  { %2119 = vmatprep.subr.mxu0 %v194_v3  ;;  %v133_v6 = vand.u32 127, %v132_v5  ;;  %v191_v19 = vld [vmem:[#allocation7 + $0x60] sm:$0xff]  ;;  %v190_v20 = vld [vmem:[#allocation7 + $0x58] sm:$0xff]  ;;  %v189_v21 = vld [vmem:[#allocation7 + $0x50] sm:$0xff]  ;;  %2156 = vmatprep.mubr.msk.f32.mxu1 %vm2538_vm1, %v2537_v2  ;;  %s2543_s6 = smov 56   ;;  %s2544_s15 = smov 112  }
  0x4b   :  { %2120 = vmatpush3.msra.mxu0 %v194_v3  ;;  %v188_v22 = vld [vmem:[#allocation7 + $0x48] sm:$0xff]  ;;  %v187_v23 = vld [vmem:[#allocation7 + $0x40] sm:$0xff]  ;;  %v186_v24 = vld [vmem:[#allocation7 + $0x38] sm:$0xff]  ;;  %s2545_s16 = smov 80   ;;  %s2546_s17 = smov 72   ;;  %vm951_vm3 = vcmask 130048  }
  0x4c   :  { %2121 = vmatprep.subr.mxu0 %v193_v4  ;;  %vm134_vm0 = vcmp.lt.s32.totalorder %v133_v6, 32  ;;  %v185_v25 = vld [vmem:[#allocation7 + $0x30] sm:$0xff]  ;;  %v184_v26 = vld [vmem:[#allocation7 + $0x28] sm:$0xff]  ;;  %v183_v27 = vld [vmem:[#allocation7 + $0x20] sm:$0xff]  ;;  %s2547_s20 = smov 104   ;;  %s2548_s21 = smov 48  }
  0x4d   :  { %141 = vadd.xlane.f32.xlu0 %v2667_v1  ;;  %2122 = vmatpush3.msra.mxu0 %v193_v4  ;;  %v2672_v9 = vsel %vm134_vm0, 1.0, %v2537_v2  ;;  %v182_v28 = vld [vmem:[#allocation7 + $0x18] sm:$0xff]  ;;  %v181_v29 = vld [vmem:[#allocation7 + $0x10] sm:$0xff]  ;;  %v180_v30 = vld [vmem:[#allocation7 + $0x8] sm:$0xff]  ;;  %s2549_s22 = smov 40   ;;  %s2550_s0 = smov 16  }
  0x4e   :  { %2123 = vmatprep.subr.mxu0 %v192_v18  ;;  %v179_v31 = vld [vmem:[#allocation7] sm:$0xff]  ;;  %v2706_v54 = vld [vmem:[#allocation5] sm:$0xff]  ;;  %s2551_s23 = smov 24   ;;  %vm953_vm4 = vcmask 195584   ;;  %vm1635_vm5 = vcmask 261120   ;;  %s2552_s28 = smov [#allocation13]  }
  0x4f   :  { %2124 = vmatpush3.msra.mxu0 %v192_v18  ;;  %v1993_v39 = vld [vmem:[%s2900_s2] ss:$0 sm:$0xff]  ;;  %s1977_s2 = sshll.u32 %s2552_s28, 4  ;;  %s1978_s2 = int_to_ptr.vmem [resolvable:$true] %s1977_s2 }
  0x50   :  { %2125 = vmatprep.subr.mxu0 %v191_v19  ;;  %v1994_v41 = vld [vmem:[%s2901_s3] ss:$0 sm:$0xff]  ;;  %s2539_s3 = smov 96   ;;  %p2504_p3 = scmp.lt.s32.totalorder %s1978_s2, %s1978_s2 }
  0x51   :  { %2126 = vmatpush3.msra.mxu0 %v191_v19  ;;  %v1995_v48 = vld [vmem:[%s2903_s5] ss:$0 sm:$0xff]  ;;  %s2541_s5 = smov 64  }
  0x52   :  { %2127 = vmatprep.subr.mxu0 %v190_v20 }
  0x53   :  { %2128 = vmatpush3.msra.mxu0 %v190_v20 }
  0x54   :  { %2129 = vmatprep.subr.mxu0 %v189_v21 }
  0x55   :  { %2130 = vmatpush3.msra.mxu0 %v189_v21 }
  0x56   :  { %2131 = vmatprep.subr.mxu0 %v188_v22 }
  0x57   :  { %2132 = vmatpush3.msra.mxu0 %v188_v22 }
  0x58   :  { %2133 = vmatprep.subr.mxu0 %v187_v23 }
  0x59   :  { %2134 = vmatpush3.msra.mxu0 %v187_v23 }
  0x5a   :  { %2135 = vmatprep.subr.mxu0 %v186_v24 }
  0x5b   :  { %2136 = vmatpush3.msra.mxu0 %v186_v24 }
  0x5c   :  { %2137 = vmatprep.subr.mxu0 %v185_v25 }
  0x5d   :  { %2138 = vmatpush3.msra.mxu0 %v185_v25 }
  0x5e   :  { %2139 = vmatprep.subr.mxu0 %v184_v26 }
  0x5f   :  { %2140 = vmatpush3.msra.mxu0 %v184_v26 }
  0x60   :  { %2141 = vmatprep.subr.mxu0 %v183_v27 }
  0x61   :  { %2142 = vmatpush3.msra.mxu0 %v183_v27 }
  0x62   :  { %2143 = vmatprep.subr.mxu0 %v182_v28 }
  0x63   :  { %2144 = vmatpush3.msra.mxu0 %v182_v28 }
  0x64   :  { %2145 = vmatprep.subr.mxu0 %v181_v29 }
  0x65   :  { %2146 = vmatpush3.msra.mxu0 %v181_v29 }
  0x66   :  { %2147 = vmatprep.subr.mxu0 %v180_v30 }
  0x67   :  { %2148 = vmatpush3.msra.mxu0 %v180_v30 }
  0x68   :  { %2149 = vmatprep.subr.mxu0 %v179_v31 }
  0x69   :  { %2150 = vmatpush3.msra.mxu0 %v179_v31 }
  0x6a   :  { %2204 = vmatprep.subr.mxu0 %v2537_v2 }
  0xd2   :  { %v140_v7 = vpop.xlane.xlu0 %139 }
  0xd3   :  { %v143_v8 = vmul.f32 0.03125, %v140_v7 }
  0xd5   :  { %v145_v10 = vsub.f32 %v2664_v0, %v143_v8 }
  0xd6   :  { %v142_v11 = vpop.xlane.xlu0 %141 }
  0xd7   :  { %v144_v12 = vmul.f32 0.03125, %v142_v11  ;;  %v147_v13 = vmul.f32 %v2672_v9, %v145_v10 }
  0xd9   :  { %v146_v14 = vsub.f32 %v2667_v1, %v144_v12  ;;  %v149_v15 = vmul.f32 %v147_v13, %v147_v13 }
  0xdb   :  { %151 = vadd.xlane.f32.xlu1 %v149_v15  ;;  %v148_v16 = vmul.f32 %v2672_v9, %v146_v14 }
  0xdd   :  { %v150_v17 = vmul.f32 %v148_v16, %v148_v16 }
  0xdf   :  { %153 = vadd.xlane.f32.xlu1 %v150_v17 }
 0x164   :  { %v152_v32 = vpop.xlane.xlu1 %151 }
 0x165   :  { %v155_v33 = vmul.f32 0.032258064, %v152_v32 }
 0x167   :  { %v157_v34 = vadd.f32 1e-06, %v155_v33 }
 0x168   :  { %v154_v35 = vpop.xlane.xlu1 %153 }
 0x169   :  { %2339 = vrsqrt.f32 %v157_v34  ;;  %v156_v36 = vmul.f32 0.032258064, %v154_v35 }
 0x16b   :  { %v158_v37 = vadd.f32 1e-06, %v156_v36 }
 0x16d   :  { %2341 = vrsqrt.f32 %v158_v37 }
 0x176   :  { %v2340_v38 = vpop.eup %2339 }
 0x177   :  { %v161_v40 = vmul.f32 %v2340_v38, %v147_v13 }
 0x179   :  { %v169_v42 = vmul.f32 %v1993_v39, %v161_v40 }
 0x17a   :  { %v2342_v43 = vpop.eup %2341 }
 0x17b   :  { %v162_v44 = vmul.f32 %v2342_v43, %v148_v16  ;;  %v177_v45 = vadd.f32 %v1994_v41, %v169_v42 }
 0x17d   :  { %v170_v46 = vmul.f32 %v1993_v39, %v162_v44  ;;  %2151 = vmatprep.mubr.f32.mxu0 %v177_v45 }
 0x17f   :  { %v178_v47 = vadd.f32 %v1994_v41, %v170_v46 }
 0x181   :  { %2152 = vmatmul.mubr.f32.vlgmr.msra.gmra.mxu0 %v178_v47 }
 0x182   :  { %2206 = vmatprep.mubr.msk.f32.mxu0 %vm2538_vm1, %v2537_v2 }
 0x241   :  { %v2153_v49 = vpop.f32.mrf.mxu0 }
 0x242   :  { %v2692_v50 = vadd.f32 %v2153_v49, %v1995_v48 }
 0x243   :  { %v268_v51 = vpop.f32.mrf.mxu0 }
 0x244   :  { %v2694_v52 = vadd.f32 %v1995_v48, %v268_v51 }
 0x246   :  { %279 = vrot.lane.b32.xlu0 %v2694_v52, %s2539_s3 }
 0x24a   :  { %445 = vrot.lane.b32.xlu0 %v2694_v52, %s2540_s29 }
 0x2b8   :  { %v280_v53 = vpop.permute.xlu0 %279 }
 0x2b9   :  { %2155 = vmatpush3.xpose.msk.msra.mxu1 %vm281_vm2, %v280_v53 }
 0x2ba   :  { %2159 = vmatprep.subr.mxu1 %v2537_v2 }
 0x2bc   :  { %2157 = vmatmul.mubr.msk.f32.vlgmr.msra.gmra.mxu1 %vm281_vm2, %v2694_v52  ;;  %v446_v7 = vpop.permute.xlu0 %445 }
 0x2bd   :  { %2161 = vmatprep.mubr.msk.f32.mxu1 %vm2538_vm1, %v2537_v2 }
 0x37c   :  { %v352_v55 = vpop.f32.mrf.mxu1 }
 0x37d   :  { %v353_v56 = vadd.f32 %v352_v55, %v2706_v54 }
 0x37e   :  { %v2158_v57 = vpop.f32.mrf.mxu1 }
 0x37f   :  { %v356_v58 = vsel %vm281_vm2, %v353_v56, -inf }
 0x380   :  { %357 = vmax.xlane.f32.xlu1 %v356_v58 }
 0x391   :  { %367 = vrot.lane.b32.xlu1 %v2694_v52, %s2541_s5 }
 0x409   :  { %v358_v59 = vpop.xlane.xlu1 %357 }
 0x40a   :  { %v359_v60 = vsub.f32 %v353_v56, %v358_v59 }
 0x40c   :  { %v360_v61 = vmul.f32 1.442695, %v359_v60 }
 0x40d   :  { %v368_v62 = vpop.permute.xlu1 %367 }
 0x40e   :  { %2343 = vpow2.f32 %v360_v61  ;;  %2160 = vmatpush3.msra.mxu1 %v368_v62 }
 0x40f   :  { %2164 = vmatprep.subr.mxu1 %v2537_v2 }
 0x41b   :  { %v2344_v63 = vpop.eup %2343 }
 0x41c   :  { %v362_v3 = vsel %vm281_vm2, %v2344_v63, 0.0 }
 0x41d   :  { %363 = vadd.xlane.f32.xlu1 %v362_v3 }
 0x42e   :  { %443 = vrot.lane.b32.xlu1 %v2694_v52, %s2542_s30 }
 0x4a6   :  { %v364_v4 = vpop.xlane.xlu1 %363 }
 0x4a7   :  { %2345 = vrcp.f32 %v364_v4 }
 0x4aa   :  { %v444_v8 = vpop.permute.xlu1 %443 }
 0x4b4   :  { %v2346_v5 = vpop.eup %2345 }
 0x4b5   :  { %v366_v6 = vmul.f32 %v2346_v5, %v2344_v63 }
 0x4b7   :  { %2162 = vmatmul.mubr.msk.f32.vlgmr.msra.gmra.mxu1 %vm281_vm2, %v366_v6  ;;  %v956_v6 = vld [vmem:[#allocation5 + $0x8] sm:$0xff] }
 0x4b8   :  { %2165 = vmatpush3.xpose.msk.msra.mxu1 %vm281_vm2, %v446_v7  ;;  %2166 = vmatprep.mubr.msk.f32.mxu1 %vm2538_vm1, %v2537_v2 }
 0x4b9   :  { %2169 = vmatprep.subr.mxu1 %v2537_v2 }
 0x4bb   :  { %2167 = vmatmul.mubr.msk.f32.vlgmr.msra.gmra.mxu1 %vm281_vm2, %v444_v8 }
 0x4bc   :  { %2171 = vmatprep.mubr.msk.f32.mxu1 %vm2538_vm1, %v2537_v2 }
 0x577   :  { %v2724_v10 = vpop.f32.mrf.mxu1 }
 0x579   :  { %v2163_v11 = vpop.f32.mrf.mxu1 }
 0x57b   :  { %v517_v12 = vpop.f32.mrf.mxu1 }
 0x57c   :  { %v518_v13 = vadd.f32 %v517_v12, %v2706_v54 }
 0x57d   :  { %v2168_v14 = vpop.f32.mrf.mxu1 }
 0x57e   :  { %v521_v15 = vsel %vm281_vm2, %v518_v13, -inf }
 0x57f   :  { %522 = vmax.xlane.f32.xlu0 %v521_v15 }
 0x595   :  { %532 = vrot.lane.b32.xlu0 %v2694_v52, %s2543_s6 }
 0x599   :  { %608 = vrot.lane.b32.xlu0 %v2694_v52, %s2544_s15 }
 0x608   :  { %v523_v16 = vpop.xlane.xlu0 %522 }
 0x609   :  { %v524_v17 = vsub.f32 %v518_v13, %v523_v16 }
 0x60b   :  { %v525_v18 = vmul.f32 1.442695, %v524_v17 }
 0x60c   :  { %v533_v19 = vpop.permute.xlu0 %532 }
 0x60d   :  { %2347 = vpow2.f32 %v525_v18  ;;  %2170 = vmatpush3.msra.mxu1 %v533_v19 }
 0x60e   :  { %2174 = vmatprep.subr.mxu1 %v2537_v2 }
 0x610   :  { %v609_v26 = vpop.permute.xlu0 %608 }
 0x61a   :  { %v2348_v20 = vpop.eup %2347 }
 0x61b   :  { %v527_v21 = vsel %vm281_vm2, %v2348_v20, 0.0 }
 0x61c   :  { %528 = vadd.xlane.f32.xlu1 %v527_v21 }
 0x62d   :  { %610 = vrot.lane.b32.xlu1 %v2694_v52, %s2545_s16 }
 0x6a5   :  { %v529_v22 = vpop.xlane.xlu1 %528 }
 0x6a6   :  { %2349 = vrcp.f32 %v529_v22 }
 0x6a9   :  { %v611_v25 = vpop.permute.xlu1 %610 }
 0x6b3   :  { %v2350_v23 = vpop.eup %2349 }
 0x6b4   :  { %v531_v24 = vmul.f32 %v2350_v23, %v2348_v20 }
 0x6b6   :  { %2172 = vmatmul.mubr.msk.f32.vlgmr.msra.gmra.mxu1 %vm281_vm2, %v531_v24 }
 0x6b7   :  { %2175 = vmatpush3.xpose.msk.msra.mxu1 %vm281_vm2, %v611_v25  ;;  %2176 = vmatprep.mubr.msk.f32.mxu1 %vm2538_vm1, %v2537_v2 }
 0x6b8   :  { %2179 = vmatprep.subr.mxu1 %v2537_v2 }
 0x6ba   :  { %2177 = vmatmul.mubr.msk.f32.vlgmr.msra.gmra.mxu1 %vm281_vm2, %v609_v26 }
 0x6bb   :  { %2181 = vmatprep.mubr.msk.f32.mxu1 %vm2538_vm1, %v2537_v2 }
 0x776   :  { %v2744_v27 = vpop.f32.mrf.mxu1 }
 0x778   :  { %v2173_v28 = vpop.f32.mrf.mxu1 }
 0x77a   :  { %v682_v29 = vpop.f32.mrf.mxu1 }
 0x77b   :  { %v683_v30 = vadd.f32 %v682_v29, %v2706_v54 }
 0x77c   :  { %v2178_v31 = vpop.f32.mrf.mxu1 }
 0x77d   :  { %v686_v32 = vsel %vm281_vm2, %v683_v30, -inf }
 0x77e   :  { %687 = vmax.xlane.f32.xlu1 %v686_v32 }
 0x78f   :  { %775 = vrot.lane.b32.xlu1 %v2694_v52, %s2546_s17 }
 0x793   :  { %773 = vrot.lane.b32.xlu1 %v2694_v52, %s2547_s20 }
 0x797   :  { %958 = vrot.lane.b32.xlu1 %v2692_v50, %s2539_s3 }
 0x807   :  { %v688_v33 = vpop.xlane.xlu1 %687 }
 0x808   :  { %v689_v34 = vsub.f32 %v683_v30, %v688_v33 }
 0x80a   :  { %v690_v35 = vmul.f32 1.442695, %v689_v34 }
 0x80b   :  { %v776_v41 = vpop.permute.xlu1 %775 }
 0x80c   :  { %2351 = vpow2.f32 %v690_v35 }
 0x80f   :  { %v774_v43 = vpop.permute.xlu1 %773 }
 0x813   :  { %v959_v58 = vpop.permute.xlu1 %958 }
 0x819   :  { %v2352_v36 = vpop.eup %2351 }
 0x81a   :  { %v692_v37 = vsel %vm281_vm2, %v2352_v36, 0.0 }
 0x81b   :  { %693 = vadd.xlane.f32.xlu0 %v692_v37 }
 0x831   :  { %697 = vrot.lane.b32.xlu0 %v2694_v52, %s2548_s21 }
 0x8a4   :  { %v694_v38 = vpop.xlane.xlu0 %693 }
 0x8a5   :  { %2353 = vrcp.f32 %v694_v38 }
 0x8a8   :  { %v698_v39 = vpop.permute.xlu0 %697 }
 0x8a9   :  { %2180 = vmatpush3.msra.mxu1 %v698_v39 }
 0x8aa   :  { %2184 = vmatprep.subr.mxu1 %v2537_v2 }
 0x8b2   :  { %v2354_v40 = vpop.eup %2353 }
 0x8b3   :  { %v696_v42 = vmul.f32 %v2354_v40, %v2352_v36 }
 0x8b5   :  { %2182 = vmatmul.mubr.msk.f32.vlgmr.msra.gmra.mxu1 %vm281_vm2, %v696_v42 }
 0x8b6   :  { %2185 = vmatpush3.xpose.msk.msra.mxu1 %vm281_vm2, %v776_v41  ;;  %2186 = vmatprep.mubr.msk.f32.mxu1 %vm2538_vm1, %v2537_v2 }
 0x8b7   :  { %2189 = vmatprep.subr.mxu1 %v2537_v2 }
 0x8b9   :  { %2187 = vmatmul.mubr.msk.f32.vlgmr.msra.gmra.mxu1 %vm281_vm2, %v774_v43 }
 0x8ba   :  { %2191 = vmatprep.mubr.msk.f32.mxu1 %vm2538_vm1, %v2537_v2 }
 0x975   :  { %v2766_v44 = vpop.f32.mrf.mxu1 }
 0x977   :  { %v2183_v45 = vpop.f32.mrf.mxu1 }
 0x979   :  { %v847_v46 = vpop.f32.mrf.mxu1 }
 0x97a   :  { %v848_v47 = vadd.f32 %v847_v46, %v2706_v54 }
 0x97b   :  { %v2188_v48 = vpop.f32.mrf.mxu1 }
 0x97c   :  { %v851_v49 = vsel %vm281_vm2, %v848_v47, -inf }
 0x97d   :  { %852 = vmax.xlane.f32.xlu0 %v851_v49 }
 0x993   :  { %862 = vrot.lane.b32.xlu0 %v2694_v52, %s2549_s22 }
 0x997   :  { %1123 = vrot.lane.b32.xlu0 %v2692_v50, %s2540_s29 }
 0x99b   :  { %1288 = vrot.lane.b32.xlu0 %v2692_v50, %s2545_s16 }
 0x99f   :  { %1453 = vrot.lane.b32.xlu0 %v2692_v50, %s2546_s17 }
 0xa06   :  { %v853_v51 = vpop.xlane.xlu0 %852 }
 0xa07   :  { %v854_v53 = vsub.f32 %v848_v47, %v853_v51 }
 0xa09   :  { %v855_v54 = vmul.f32 1.442695, %v854_v53 }
 0xa0a   :  { %v863_v55 = vpop.permute.xlu0 %862 }
 0xa0b   :  { %2355 = vpow2.f32 %v855_v54  ;;  %2190 = vmatpush3.msra.mxu1 %v863_v55 }
 0xa0c   :  { %2194 = vmatprep.subr.mxu1 %v2537_v2 }
 0xa0e   :  { %v1124_v56 = vpop.permute.xlu0 %1123 }
 0xa0f   :  { %2205 = vmatpush3.xpose.msk.msra.mxu0 %vm281_vm2, %v1124_v56 }
 0xa10   :  { %2214 = vmatprep.subr.mxu0 %v2537_v2 }
 0xa12   :  { %v1289_v60 = vpop.permute.xlu0 %1288 }
 0xa16   :  { %v1454_v63 = vpop.permute.xlu0 %1453 }
 0xa18   :  { %v2356_v52 = vpop.eup %2355 }
 0xa19   :  { %v857_v57 = vsel %vm281_vm2, %v2356_v52, 0.0 }
 0xa1a   :  { %858 = vadd.xlane.f32.xlu1 %v857_v57 }
 0xa2b   :  { %1121 = vrot.lane.b32.xlu1 %v2692_v50, %s2542_s30 }
 0xa2f   :  { %1286 = vrot.lane.b32.xlu1 %v2692_v50, %s2544_s15 }
 0xa33   :  { %1451 = vrot.lane.b32.xlu1 %v2692_v50, %s2547_s20 }
 0xaa3   :  { %v859_v59 = vpop.xlane.xlu1 %858 }
 0xaa4   :  { %2357 = vrcp.f32 %v859_v59 }
 0xaa7   :  { %v1122_v61 = vpop.permute.xlu1 %1121 }
 0xaa8   :  { %2207 = vmatmul.mubr.msk.f32.vlgmr.msra.gmra.mxu0 %vm281_vm2, %v1122_v61 }
 0xaa9   :  { %2215 = vmatpush3.xpose.msk.msra.mxu0 %vm281_vm2, %v1289_v60  ;;  %2216 = vmatprep.mubr.msk.f32.mxu0 %vm2538_vm1, %v2537_v2 }
 0xaaa   :  { %2224 = vmatprep.subr.mxu0 %v2537_v2 }
 0xaab   :  { %v1287_v62 = vpop.permute.xlu1 %1286 }
 0xaac   :  { %2217 = vmatmul.mubr.msk.f32.vlgmr.msra.gmra.mxu0 %vm281_vm2, %v1287_v62 }
 0xaad   :  { %2225 = vmatpush3.xpose.msk.msra.mxu0 %vm281_vm2, %v1454_v63  ;;  %2226 = vmatprep.mubr.msk.f32.mxu0 %vm2538_vm1, %v2537_v2 }
 0xaaf   :  { %v1452_v3 = vpop.permute.xlu1 %1451 }
 0xab0   :  { %2227 = vmatmul.mubr.msk.f32.vlgmr.msra.gmra.mxu0 %vm281_vm2, %v1452_v3 }
 0xab1   :  { %v2358_v4 = vpop.eup %2357 }
 0xab2   :  { %v861_v5 = vmul.f32 %v2358_v4, %v2356_v52 }
 0xab4   :  { %2192 = vmatmul.mubr.msk.f32.vlgmr.msra.gmra.mxu1 %vm281_vm2, %v861_v5 }
 0xab5   :  { %2195 = vmatpush3.xpose.msk.msra.mxu1 %vm281_vm2, %v959_v58  ;;  %2196 = vmatprep.mubr.msk.f32.mxu1 %vm2538_vm1, %v2537_v2 }
 0xab6   :  { %2199 = vmatprep.subr.mxu1 %v2537_v2 }
 0xab8   :  { %2197 = vmatmul.mubr.msk.f32.vlgmr.msra.gmra.mxu1 %vm281_vm2, %v2692_v50 }
 0xab9   :  { %2201 = vmatprep.mubr.msk.f32.mxu1 %vm2538_vm1, %v2537_v2 }
 0xb68   :  { %v1195_v7 = vpop.f32.mrf.mxu0 }
 0xb69   :  { %v1196_v8 = vadd.f32 %v1195_v7, %v956_v6  ;;  %v1634_v7 = vld [vmem:[#allocation8 + $0x18] sm:$0xff] }
 0xb6a   :  { %v2208_v11 = vpop.f32.mrf.mxu0  ;;  %2234 = vmatprep.subr.mxu0 %v1634_v7 }
 0xb6b   :  { %v1199_v12 = vsel %vm281_vm2, %v1196_v8, -inf  ;;  %2235 = vmatpush3.msra.mxu0 %v1634_v7  ;;  %v1632_v11 = vld [vmem:[#allocation8 + $0x8] sm:$0xff] }
 0xb6c   :  { %1200 = vmax.xlane.f32.xlu1 %v1199_v12  ;;  %v1360_v13 = vpop.f32.mrf.mxu0  ;;  %v1631_v12 = vld [vmem:[#allocation8] sm:$0xff] }
 0xb6d   :  { %v1361_v22 = vadd.f32 %v1360_v13, %v956_v6 }
 0xb6e   :  { %v2218_v14 = vpop.f32.mrf.mxu0 }
 0xb6f   :  { %v1364_v25 = vsel %vm281_vm2, %v1361_v22, -inf }
 0xb70   :  { %v1525_v15 = vpop.f32.mrf.mxu0 }
 0xb71   :  { %v1526_v24 = vadd.f32 %v1525_v15, %v956_v6 }
 0xb72   :  { %v2228_v16 = vpop.f32.mrf.mxu0 }
 0xb73   :  { %v1529_v26 = vsel %vm281_vm2, %v1526_v24, -inf }
 0xb74   :  { %v934_v17 = vpop.f32.mrf.mxu1 }
 0xb76   :  { %v2193_v18 = vpop.f32.mrf.mxu1 }
 0xb78   :  { %v1030_v19 = vpop.f32.mrf.mxu1 }
 0xb79   :  { %v1031_v20 = vadd.f32 %v1030_v19, %v956_v6 }
 0xb7a   :  { %v2198_v21 = vpop.f32.mrf.mxu1 }
 0xb7b   :  { %v1034_v23 = vsel %vm281_vm2, %v1031_v20, -inf }
 0xb7c   :  { %1035 = vmax.xlane.f32.xlu0 %v1034_v23 }
 0xb80   :  { %1365 = vmax.xlane.f32.xlu0 %v1364_v25 }
 0xb84   :  { %1530 = vmax.xlane.f32.xlu0 %v1529_v26 }
 0xbf5   :  { %v1201_v28 = vpop.xlane.xlu1 %1200 }
 0xbf6   :  { %v1202_v29 = vsub.f32 %v1196_v8, %v1201_v28  ;;  %v1633_v8 = vld [vmem:[#allocation8 + $0x10] sm:$0xff]  ;;  %v2022_v28 = vld [vmem:[%s2905_s7] ss:$0 sm:$0xff] }
 0xbf7   :  { %2236 = vmatprep.subr.mxu0 %v1633_v8 }
 0xbf8   :  { %v1203_v30 = vmul.f32 1.442695, %v1202_v29  ;;  %2237 = vmatpush3.msra.mxu0 %v1633_v8 }
 0xbf9   :  { %2238 = vmatprep.subr.mxu0 %v1632_v11 }
 0xbfa   :  { %2359 = vpow2.f32 %v1203_v30  ;;  %2239 = vmatpush3.msra.mxu0 %v1632_v11 }
 0xbfb   :  { %2240 = vmatprep.subr.mxu0 %v1631_v12 }
 0xbfc   :  { %2241 = vmatpush3.msra.mxu0 %v1631_v12 }
 0xc05   :  { %v1036_v31 = vpop.xlane.xlu0 %1035 }
 0xc06   :  { %v1037_v33 = vsub.f32 %v1031_v20, %v1036_v31 }
 0xc07   :  { %v2360_v32 = vpop.eup %2359 }
 0xc08   :  { %v1205_v34 = vsel %vm281_vm2, %v2360_v32, 0.0  ;;  %v1038_v37 = vmul.f32 1.442695, %v1037_v33 }
 0xc09   :  { %1206 = vadd.xlane.f32.xlu1 %v1205_v34  ;;  %v1366_v35 = vpop.xlane.xlu0 %1365  ;;  %v1785_v34 = vld [vmem:[#allocation10 + $0x78] sm:$0xff] }
 0xc0a   :  { %v1367_v36 = vsub.f32 %v1361_v22, %v1366_v35  ;;  %v1784_v35 = vld [vmem:[#allocation10 + $0x70] sm:$0xff] }
 0xc0c   :  { %v1368_v38 = vmul.f32 1.442695, %v1367_v36 }
 0xc0d   :  { %v1531_v39 = vpop.xlane.xlu0 %1530 }
 0xc0e   :  { %2361 = vpow2.f32 %v1368_v38  ;;  %v1532_v40 = vsub.f32 %v1526_v24, %v1531_v39 }
 0xc0f   :  { %2363 = vpow2.f32 %v1038_v37 }
 0xc10   :  { %v1533_v41 = vmul.f32 1.442695, %v1532_v40 }
 0xc12   :  { %2365 = vpow2.f32 %v1533_v41 }
 0xc1b   :  { %v2362_v42 = vpop.eup %2361 }
 0xc1c   :  { %v1370_v43 = vsel %vm281_vm2, %v2362_v42, 0.0  ;;  %v2364_v45 = vpop.eup %2363 }
 0xc1d   :  { %1371 = vadd.xlane.f32.xlu0 %v1370_v43  ;;  %v1040_v47 = vsel %vm281_vm2, %v2364_v45, 0.0 }
 0xc1f   :  { %v2366_v46 = vpop.eup %2365 }
 0xc20   :  { %v1535_v48 = vsel %vm281_vm2, %v2366_v46, 0.0 }
 0xc21   :  { %1041 = vadd.xlane.f32.xlu0 %v1040_v47  ;;  %1536 = vadd.xlane.f32.xlu1 %v1535_v48  ;;  %v1781_v47 = vld [vmem:[#allocation10 + $0x58] sm:$0xff]  ;;  %v1780_v48 = vld [vmem:[#allocation10 + $0x50] sm:$0xff] }
 0xc32   :  { %1210 = vrot.lane.b32.xlu1 %v2692_v50, %s2543_s6 }
 0xc36   :  { %1375 = vrot.lane.b32.xlu1 %v2692_v50, %s2548_s21 }
 0xc37   :  { %1045 = vrot.lane.b32.xlu0 %v2692_v50, %s2541_s5 }
 0xc3a   :  { %1540 = vrot.lane.b32.xlu1 %v2692_v50, %s2549_s22 }
 0xc3b   :  { %939 = vrot.lane.b32.xlu0 %v2744_v27, %s2532_s19 }
 0xc3e   :  { %943 = vrot.lane.b32.xlu1 %v2766_v44, %s2550_s0 }
 0xc42   :  { %947 = vrot.lane.b32.xlu1 %v934_v17, %s2551_s23 }
 0xc92   :  { %v1207_v49 = vpop.xlane.xlu1 %1206 }
 0xca6   :  { %v1372_v51 = vpop.xlane.xlu0 %1371 }
 0xcaa   :  { %v1537_v53 = vpop.xlane.xlu1 %1536  ;;  %v1042_v54 = vpop.xlane.xlu0 %1041 }
 0xcab   :  { %2367 = vrcp.f32 %v1042_v54  ;;  %v1775_v54 = vld [vmem:[#allocation10 + $0x28] sm:$0xff] }
 0xcac   :  { %2369 = vrcp.f32 %v1207_v49  ;;  %v1779_v49 = vld [vmem:[#allocation10 + $0x48] sm:$0xff] }
 0xcad   :  { %2371 = vrcp.f32 %v1372_v51  ;;  %v1777_v51 = vld [vmem:[#allocation10 + $0x38] sm:$0xff] }
 0xcae   :  { %v1211_v55 = vpop.permute.xlu1 %1210  ;;  %v1046_v56 = vpop.permute.xlu0 %1045  ;;  %2373 = vrcp.f32 %v1537_v53  ;;  %v1776_v53 = vld [vmem:[#allocation10 + $0x30] sm:$0xff] }
 0xcaf   :  { %2200 = vmatpush3.msra.mxu1 %v1046_v56  ;;  %v1773_v56 = vld [vmem:[#allocation10 + $0x18] sm:$0xff] }
 0xcb0   :  { %2209 = vmatprep.subr.mxu1 %v2537_v2 }
 0xcb2   :  { %v1376_v50 = vpop.permute.xlu1 %1375  ;;  %v940_v44 = vpop.permute.xlu0 %939 }
 0xcb3   :  { %v950_v60 = vsel %vm281_vm2, %v2724_v10, %v940_v44  ;;  %v1885_v44 = vld [vmem:[#allocation11 + $0x78] sm:$0xff] }
 0xcb4   :  { %2280 = vmatprep.subr.mxu0 %v1885_v44 }
 0xcb6   :  { %v1541_v27 = vpop.permute.xlu1 %1540 }
 0xcb8   :  { %v2368_v52 = vpop.eup %2367 }
 0xcb9   :  { %v1044_v58 = vmul.f32 %v2368_v52, %v2364_v45  ;;  %v2370_v59 = vpop.eup %2369  ;;  %v1783_v45 = vld [vmem:[#allocation10 + $0x68] sm:$0xff]  ;;  %v1770_v52 = vld [vmem:[#allocation10] sm:$0xff] }
 0xcba   :  { %v944_v57 = vpop.permute.xlu1 %943  ;;  %v1209_v63 = vmul.f32 %v2370_v59, %v2360_v32  ;;  %v2372_v3 = vpop.eup %2371  ;;  %v1882_v59 = vld [vmem:[#allocation11 + $0x60] sm:$0xff] }
 0xcbb   :  { %2202 = vmatmul.mubr.msk.f32.vlgmr.msra.gmra.mxu1 %vm281_vm2, %v1044_v58  ;;  %v952_v61 = vsel %vm951_vm3, %v950_v60, %v944_v57  ;;  %v1374_v10 = vmul.f32 %v2372_v3, %v2362_v42  ;;  %v2374_v5 = vpop.eup %2373  ;;  %v1884_v57 = vld [vmem:[#allocation11 + $0x70] sm:$0xff]  ;;  %v1883_v58 = vld [vmem:[#allocation11 + $0x68] sm:$0xff]  ;;  %v1881_v60 = vld [vmem:[#allocation11 + $0x58] sm:$0xff] }
 0xcbc   :  { %2210 = vmatpush3.msra.mxu1 %v1211_v55  ;;  %2211 = vmatprep.mubr.msk.f32.mxu1 %vm2538_vm1, %v2537_v2  ;;  %v1539_v6 = vmul.f32 %v2374_v5, %v2366_v46  ;;  %v1782_v46 = vld [vmem:[#allocation10 + $0x60] sm:$0xff]  ;;  %v1877_v3 = vld [vmem:[#allocation11 + $0x38] sm:$0xff] }
 0xcbd   :  { %2219 = vmatprep.subr.mxu1 %v2537_v2  ;;  %v1774_v55 = vld [vmem:[#allocation10 + $0x20] sm:$0xff] }
 0xcbe   :  { %v948_v62 = vpop.permute.xlu1 %947  ;;  %v1874_v5 = vld [vmem:[#allocation11 + $0x20] sm:$0xff] }
 0xcbf   :  { %v954_v4 = vsel %vm953_vm4, %v952_v61, %v948_v62  ;;  %2212 = vmatmul.mubr.msk.f32.vlgmr.msra.gmra.mxu1 %vm281_vm2, %v1209_v63  ;;  %v1880_v61 = vld [vmem:[#allocation11 + $0x50] sm:$0xff]  ;;  %v1879_v62 = vld [vmem:[#allocation11 + $0x48] sm:$0xff]  ;;  %v1878_v63 = vld [vmem:[#allocation11 + $0x40] sm:$0xff] }
 0xcc0   :  { %2242 = vmatprep.mubr.msk.f32.mxu0 %vm1635_vm5, %v954_v4  ;;  %2220 = vmatpush3.msra.mxu1 %v1376_v50  ;;  %v1772_v50 = vld [vmem:[#allocation10 + $0x10] sm:$0xff] }
 0xcc1   :  { %2221 = vmatprep.mubr.msk.f32.mxu1 %vm2538_vm1, %v2537_v2  ;;  %2229 = vmatprep.subr.mxu1 %v2537_v2  ;;  %v1876_v4 = vld [vmem:[#allocation11 + $0x30] sm:$0xff] }
 0xcc3   :  { %2222 = vmatmul.mubr.msk.f32.vlgmr.msra.gmra.mxu1 %vm281_vm2, %v1374_v10  ;;  %v1875_v10 = vld [vmem:[#allocation11 + $0x28] sm:$0xff] }
 0xcc4   :  { %2230 = vmatpush3.msra.mxu1 %v1541_v27  ;;  %2231 = vmatprep.mubr.msk.f32.mxu1 %vm2538_vm1, %v2537_v2  ;;  %v1771_v27 = vld [vmem:[#allocation10 + $0x8] sm:$0xff] }
 0xcc5   :  { %2245 = vmatprep.subr.mxu1 %v1785_v34 }
 0xcc7   :  { %2232 = vmatmul.mubr.msk.f32.vlgmr.msra.gmra.mxu1 %vm281_vm2, %v1539_v6 }
 0xcc8   :  { %2246 = vmatpush3.msra.mxu1 %v1785_v34 }
 0xcc9   :  { %2247 = vmatprep.subr.mxu1 %v1784_v35 }
 0xcca   :  { %2248 = vmatpush3.msra.mxu1 %v1784_v35 }
 0xccb   :  { %2249 = vmatprep.subr.mxu1 %v1783_v45 }
 0xccc   :  { %2250 = vmatpush3.msra.mxu1 %v1783_v45 }
 0xccd   :  { %2251 = vmatprep.subr.mxu1 %v1782_v46 }
 0xcce   :  { %2252 = vmatpush3.msra.mxu1 %v1782_v46 }
 0xccf   :  { %2253 = vmatprep.subr.mxu1 %v1781_v47 }
 0xcd0   :  { %2254 = vmatpush3.msra.mxu1 %v1781_v47 }
 0xcd1   :  { %2255 = vmatprep.subr.mxu1 %v1780_v48 }
 0xcd2   :  { %2256 = vmatpush3.msra.mxu1 %v1780_v48 }
 0xcd3   :  { %2257 = vmatprep.subr.mxu1 %v1779_v49 }
 0xcd4   :  { %2258 = vmatpush3.msra.mxu1 %v1779_v49 }
 0xd7b   :  { %v1117_v13 = vpop.f32.mrf.mxu1 }
 0xd7d   :  { %v2203_v14 = vpop.f32.mrf.mxu1 }
 0xd7f   :  { %v1282_v15 = vpop.f32.mrf.mxu1 }
 0xd80   :  { %1617 = vrot.lane.b32.xlu0 %v1282_v15, %s2532_s19  ;;  %v2023_v15 = vld [vmem:[%s2906_s8] ss:$0 sm:$0xff] }
 0xd81   :  { %v2213_v2 = vpop.f32.mrf.mxu1 }
 0xd83   :  { %v1447_v16 = vpop.f32.mrf.mxu1 }
 0xd84   :  { %1621 = vrot.lane.b32.xlu0 %v1447_v16, %s2550_s0  ;;  %v2024_v16 = vld [vmem:[%s2907_s9] ss:$0 sm:$0xff] }
 0xd85   :  { %v2223_v17 = vpop.f32.mrf.mxu1 }
 0xd87   :  { %v1612_v18 = vpop.f32.mrf.mxu1 }
 0xd88   :  { %1625 = vrot.lane.b32.xlu1 %v1612_v18, %s2551_s23 }
 0xd89   :  { %v2233_v19 = vpop.f32.mrf.mxu1 }
 0xdf2   :  { %v1618_v20 = vpop.permute.xlu0 %1617 }
 0xdf3   :  { %v1628_v22 = vsel %vm281_vm2, %v1117_v13, %v1618_v20 }
 0xdf6   :  { %v1622_v21 = vpop.permute.xlu0 %1621 }
 0xdf7   :  { %v1629_v23 = vsel %vm951_vm3, %v1628_v22, %v1622_v21 }
 0xdfa   :  { %v1626_v24 = vpop.permute.xlu1 %1625 }
 0xdfb   :  { %v1630_v25 = vsel %vm953_vm4, %v1629_v23, %v1626_v24  ;;  %v1873_v23 = vld [vmem:[#allocation11 + $0x18] sm:$0xff]  ;;  %v1872_v24 = vld [vmem:[#allocation11 + $0x10] sm:$0xff] }
 0xdfc   :  { %2243 = vmatmul.mubr.msk.f32.vlgmr.msra.gmra.mxu0 %vm1635_vm5, %v1630_v25  ;;  %v1871_v25 = vld [vmem:[#allocation11 + $0x8] sm:$0xff] }
 0xdfd   :  { %2281 = vmatpush3.msra.mxu0 %v1885_v44 }
 0xdfe   :  { %2282 = vmatprep.subr.mxu0 %v1884_v57 }
 0xdff   :  { %2283 = vmatpush3.msra.mxu0 %v1884_v57 }
 0xe00   :  { %2284 = vmatprep.subr.mxu0 %v1883_v58 }
 0xe01   :  { %2285 = vmatpush3.msra.mxu0 %v1883_v58 }
 0xe02   :  { %2286 = vmatprep.subr.mxu0 %v1882_v59 }
 0xe03   :  { %2287 = vmatpush3.msra.mxu0 %v1882_v59 }
 0xe04   :  { %2288 = vmatprep.subr.mxu0 %v1881_v60 }
 0xe05   :  { %2289 = vmatpush3.msra.mxu0 %v1881_v60 }
 0xe06   :  { %2290 = vmatprep.subr.mxu0 %v1880_v61 }
 0xe07   :  { %2291 = vmatpush3.msra.mxu0 %v1880_v61 }
 0xe08   :  { %2292 = vmatprep.subr.mxu0 %v1879_v62 }
 0xe09   :  { %2293 = vmatpush3.msra.mxu0 %v1879_v62 }
 0xe0a   :  { %2294 = vmatprep.subr.mxu0 %v1878_v63 }
 0xe0b   :  { %2295 = vmatpush3.msra.mxu0 %v1878_v63 }
 0xe0c   :  { %2296 = vmatprep.subr.mxu0 %v1877_v3 }
 0xe0d   :  { %2297 = vmatpush3.msra.mxu0 %v1877_v3 }
 0xe0e   :  { %2298 = vmatprep.subr.mxu0 %v1876_v4 }
 0xe0f   :  { %2299 = vmatpush3.msra.mxu0 %v1876_v4 }
 0xe10   :  { %2300 = vmatprep.subr.mxu0 %v1875_v10 }
 0xe11   :  { %2301 = vmatpush3.msra.mxu0 %v1875_v10 }
 0xe12   :  { %2302 = vmatprep.subr.mxu0 %v1874_v5 }
 0xe13   :  { %2303 = vmatpush3.msra.mxu0 %v1874_v5 }
 0xe14   :  { %2304 = vmatprep.subr.mxu0 %v1873_v23 }
 0xe15   :  { %2305 = vmatpush3.msra.mxu0 %v1873_v23 }
 0xe16   :  { %2306 = vmatprep.subr.mxu0 %v1872_v24 }
 0xe17   :  { %2307 = vmatpush3.msra.mxu0 %v1872_v24 }
 0xe18   :  { %2308 = vmatprep.subr.mxu0 %v1871_v25 }
 0xe19   :  { %2309 = vmatpush3.msra.mxu0 %v1871_v25 }
 0xebc   :  { %v2244_v26 = vpop.f32.mrf.mxu0 }
 0xebd   :  { %v1718_v29 = vadd.f32 %v2244_v26, %v2667_v1  ;;  %v1870_v26 = vld [vmem:[#allocation11] sm:$0xff] }
 0xebe   :  { %v1708_v30 = vpop.f32.mrf.mxu0  ;;  %2310 = vmatprep.subr.mxu0 %v1870_v26 }
 0xebf   :  { %v2857_v31 = vadd.f32 %v2022_v28, %v1718_v29  ;;  %v1717_v32 = vadd.f32 %v1708_v30, %v2664_v0  ;;  %2311 = vmatpush3.msra.mxu0 %v1870_v26 }
 0xec1   :  { %v2860_v33 = vadd.f32 %v2022_v28, %v1717_v32  ;;  %1732 = vadd.xlane.f32.xlu1 %v2857_v31  ;;  %v2025_v28 = vld [vmem:[%s2909_s11] ss:$0 sm:$0xff]  ;;  %s2499_s11 = scalar_lea.vmem %s1978_s2, 256 }
 0xec2   :  { %p2500_p2 = scmp.ne.s32.totalorder %s1978_s2, %s2499_s11  ;;  %p2505_p4 = scmp.lt.s32.totalorder %s2499_s11, %s2499_s11 }
 0xec3   :  { %1730 = vadd.xlane.f32.xlu0 %v2860_v33 }
 0xec4   :  { %p2506_p5 = por %p2505_p4, %p2504_p3 }
 0xec6   :  { %p2507_p6 = pnand %p2506_p5, %p2500_p2 }
 0xf4a   :  { %v1733_v36 = vpop.xlane.xlu1 %1732 }
 0xf4b   :  { %v1735_v37 = vmul.f32 0.03125, %v1733_v36 }
 0xf4c   :  { %v1731_v1 = vpop.xlane.xlu0 %1730 }
 0xf4d   :  { %v1734_v38 = vmul.f32 0.03125, %v1731_v1  ;;  %v1737_v39 = vsub.f32 %v2857_v31, %v1735_v37  ;;  %v2026_v37 = vld [vmem:[%s2911_s13] ss:$0 sm:$0xff] }
 0xf4f   :  { %v1736_v0 = vsub.f32 %v2860_v33, %v1734_v38  ;;  %v2872_v42 = vmul.f32 %v2672_v9, %v1737_v39 }
 0xf51   :  { %v2867_v40 = vmul.f32 %v2672_v9, %v1736_v0  ;;  %v1741_v43 = vmul.f32 %v2872_v42, %v2872_v42  ;;  %v1778_v9 = vld [vmem:[#allocation10 + $0x40] sm:$0xff] }
 0xf52   :  { %2259 = vmatprep.subr.mxu1 %v1778_v9 }
 0xf53   :  { %v1740_v41 = vmul.f32 %v2867_v40, %v2867_v40  ;;  %2260 = vmatpush3.msra.mxu1 %v1778_v9 }
 0xf54   :  { %2261 = vmatprep.subr.mxu1 %v1777_v51 }
 0xf55   :  { %1742 = vadd.xlane.f32.xlu0 %v1740_v41  ;;  %2262 = vmatpush3.msra.mxu1 %v1777_v51 }
 0xf56   :  { %2263 = vmatprep.subr.mxu1 %v1776_v53 }
 0xf57   :  { %2264 = vmatpush3.msra.mxu1 %v1776_v53 }
 0xf58   :  { %2265 = vmatprep.subr.mxu1 %v1775_v54 }
 0xf59   :  { %1744 = vadd.xlane.f32.xlu0 %v1741_v43  ;;  %2266 = vmatpush3.msra.mxu1 %v1775_v54 }
 0xf5a   :  { %2267 = vmatprep.subr.mxu1 %v1774_v55 }
 0xf5b   :  { %2268 = vmatpush3.msra.mxu1 %v1774_v55 }
 0xf5c   :  { %2269 = vmatprep.subr.mxu1 %v1773_v56 }
 0xf5d   :  { %2270 = vmatpush3.msra.mxu1 %v1773_v56 }
 0xf5e   :  { %2271 = vmatprep.subr.mxu1 %v1772_v50 }
 0xf5f   :  { %2272 = vmatpush3.msra.mxu1 %v1772_v50 }
 0xf60   :  { %2273 = vmatprep.subr.mxu1 %v1771_v27 }
 0xf61   :  { %2274 = vmatpush3.msra.mxu1 %v1771_v27 }
 0xf62   :  { %2275 = vmatprep.subr.mxu1 %v1770_v52 }
 0xf63   :  { %2276 = vmatpush3.msra.mxu1 %v1770_v52 }
 0xfde   :  { %v1743_v6 = vpop.xlane.xlu0 %1742 }
 0xfdf   :  { %v1746_v7 = vmul.f32 0.032258064, %v1743_v6 }
 0xfe1   :  { %v1748_v8 = vadd.f32 1e-06, %v1746_v7 }
 0xfe2   :  { %v1745_v11 = vpop.xlane.xlu0 %1744 }
 0xfe3   :  { %2375 = vrsqrt.f32 %v1748_v8  ;;  %v1747_v12 = vmul.f32 0.032258064, %v1745_v11 }
 0xfe5   :  { %v1749_v13 = vadd.f32 1e-06, %v1747_v12 }
 0xfe7   :  { %2377 = vrsqrt.f32 %v1749_v13 }
 0xff0   :  { %v2376_v14 = vpop.eup %2375 }
 0xff1   :  { %v1752_v2 = vmul.f32 %v2376_v14, %v2867_v40 }
 0xff3   :  { %v1760_v17 = vmul.f32 %v2023_v15, %v1752_v2 }
 0xff4   :  { %v2378_v18 = vpop.eup %2377 }
 0xff5   :  { %v1753_v19 = vmul.f32 %v2378_v18, %v2872_v42  ;;  %v1768_v20 = vadd.f32 %v2024_v16, %v1760_v17 }
 0xff7   :  { %v1761_v21 = vmul.f32 %v2023_v15, %v1753_v19  ;;  %2277 = vmatprep.mubr.f32.mxu1 %v1768_v20 }
 0xff9   :  { %v1769_v22 = vadd.f32 %v2024_v16, %v1761_v21 }
 0xffb   :  { %2278 = vmatmul.mubr.f32.vlgmr.msra.gmra.mxu1 %v1769_v22 }
0x10bb   :  { %v2279_v29 = vpop.f32.mrf.mxu1 }
0x10bc   :  { %v1865_v30 = vadd.f32 %v2279_v29, %v2025_v28 }
0x10bd   :  { %v1859_v32 = vpop.f32.mrf.mxu1 }
0x10be   :  { %v1860_v34 = vadd.f32 %v2025_v28, %v1859_v32  ;;  %v1869_v36 = vmax.f32 %v1865_v30, 0.0 }
0x10c0   :  { %v1868_v35 = vmax.f32 %v1860_v34, 0.0 }
0x10c2   :  { %2312 = vmatprep.mubr.f32.mxu0 %v1868_v35 }
0x10c3   :  { %2313 = vmatmul.mubr.f32.vlgmr.msra.gmra.mxu0 %v1869_v36 }
0x1183   :  { %v2314_v1 = vpop.f32.mrf.mxu0 }
0x1184   :  { %v1965_v38 = vadd.f32 %v2314_v1, %v2026_v37 }
0x1185   :  { %v1959_v39 = vpop.f32.mrf.mxu0 }
0x1186   :  { %v1969_v0 = vadd.f32 %v1965_v38, %v2857_v31  ;;  %v1960_v40 = vadd.f32 %v2026_v37, %v1959_v39 }
0x1188   :  { %1971 = vst [vmem:[#allocation13 + $0x8] sm:$0xff] %v1969_v0  ;;  %v1968_v41 = vadd.f32 %v1960_v40, %v2860_v33 }
0x118a   :  { %1970 = vst [vmem:[#allocation13] sm:$0xff] %v1968_v41 }
0x118b   :  { %2510 = shalt.err (!%p2507_p6)
}
0x118c   :  { %1983 = dma.vmem_to_hbm [thread:$0]  %s1978_s2, 256, %s2912_s14, [#allocation4], %s2531_s18, %s2531_s18, %s2532_s19  }
0x118d   :  { %2527 = dma.done.wait [#allocation4], 256  }
0x118e   :  { %2528 = vsyncadd [#allocation4], 4294967040 }
0x118f   :  { %1987 = vsyncpa [#allocation3], 1 }
0x1190   :  { %1988 = vsyncpa [#allocation6], 1 }
0x1191   :  { %1989 = vsyncpa [#allocation9], 1 }
0x1192   :  { %1990 = vsyncpa [#allocation12], 1 }
0x1193   :  { %1991 = vsyncpa [#allocation4], 1 }

</bundles_post_ra>
